<compile_context>
chip_gen: v7x
topology: tpu7x:2x2x1
jax: 0.10.0
libtpu: 0.0.40
codegen_flags: <defaults>
</compile_context>

<pallas_src>
import functools

import jax
import jax.numpy as jnp
from jax.experimental import pallas as pl
from jax.experimental.pallas import tpu as pltpu


# ------------------------- per-generation VMEM budget -----------------------

_VMEM_LIMIT_CACHE = None


def _vmem_limit_bytes():
    """~75% of physical VMEM: ~96 MiB on v5e/v6e (128 MiB), 48 MiB on v7x."""
    global _VMEM_LIMIT_CACHE
    if _VMEM_LIMIT_CACHE is None:
        try:
            cap = pltpu.get_tpu_info().vmem_capacity_bytes
        except Exception:
            cap = 64 * 1024 * 1024          # conservative v7x fallback
        _VMEM_LIMIT_CACHE = min(int(cap * 3 // 4), 100 * 1024 * 1024)
    return _VMEM_LIMIT_CACHE


def _cparams(dims):
    return pltpu.CompilerParams(dimension_semantics=dims,
                                vmem_limit_bytes=_vmem_limit_bytes())


def _pick_tile(dim, pref, align):
    """Largest tile <= pref that divides dim, preferring multiples of align."""
    if dim <= pref:
        return dim
    t = (pref // align) * align
    while t >= align:
        if dim % t == 0:
            return t
        t -= align
    return dim


# ----------------------------- Pallas kernels -------------------------------


def _linear_kernel(x_ref, w_ref, b_ref, o_ref, *, activation):
    """Weight-stationary y = x @ W + b (+ optional GELU); full-K, full-N."""
    y = jnp.dot(x_ref[...], w_ref[...], preferred_element_type=jnp.float32)
    y = y + b_ref[...]
    if activation == "gelu":
        # TODO(synk): HF BERT default is the exact erf-GELU; tanh approximation
        # kept for Mosaic lowering compatibility (~1e-3 deviation).
        c = jnp.float32(0.7978845608028654)  # sqrt(2/pi)
        y = 0.5 * y * (1.0 + jnp.tanh(c * (y + 0.044715 * y * y * y)))
    o_ref[...] = y.astype(o_ref.dtype)


def _linear_qkv_kernel(x_ref, w_ref, b_ref, o_ref):
    """One Q/K/V panel per grid step: y_p = x @ W_p + b_p, panel resident."""
    y = jnp.dot(x_ref[...], w_ref[0], preferred_element_type=jnp.float32)
    o_ref[0] = (y + b_ref[0]).astype(o_ref.dtype)


def _linear_ln_kernel(x_ref, w_ref, b_ref, r_ref, g_ref, bt_ref, o_ref):
    """y = LayerNorm(x @ W + b + residual); full row, f32 epilogue."""
    y = jnp.dot(x_ref[...], w_ref[...], preferred_element_type=jnp.float32)
    y = y + b_ref[...] + r_ref[...].astype(jnp.float32)
    mean = jnp.mean(y, axis=-1, keepdims=True)
    var = jnp.mean((y - mean) * (y - mean), axis=-1, keepdims=True)
    yn = (y - mean) * jax.lax.rsqrt(var + 1e-12)
    o_ref[...] = (yn * g_ref[...] + bt_ref[...]).astype(o_ref.dtype)


def _layernorm_kernel(x_ref, g_ref, b_ref, o_ref):
    """LayerNorm(x) (no residual), BERT eps=1e-12, stats in f32."""
    x = x_ref[...].astype(jnp.float32)
    mean = jnp.mean(x, axis=-1, keepdims=True)
    var = jnp.mean((x - mean) * (x - mean), axis=-1, keepdims=True)
    xn = (x - mean) * jax.lax.rsqrt(var + 1e-12)
    o_ref[...] = (xn * g_ref[...] + b_ref[...]).astype(o_ref.dtype)


def _flash_attn_kernel(q_ref, k_ref, v_ref, bias_ref, o_ref,
                       m_sc, l_sc, acc_sc, *, heads, dh, scale):
    """Flash-style online-softmax attention. Q/K/V streams arrive as separate
    D-wide panels; heads are split inside the kernel and the output is merged
    back to a lane-dense [tq, D] tile."""
    kvi = pl.program_id(2)

    @pl.when(kvi == 0)
    def _():
        m_sc[...] = jnp.full_like(m_sc, -jnp.inf)
        l_sc[...] = jnp.zeros_like(l_sc)
        acc_sc[...] = jnp.zeros_like(acc_sc)

    bias = bias_ref[0]                         # (1, tkv) f32 additive mask

    for h in range(heads):                     # static unroll over heads
        # Per-head (tq, dh)/(tkv, dh) loads straight from the D-wide VMEM tile.
        # TODO(synk): with dh=64 the odd-head slices start at non-128-lane
        # offsets (XLU shuffle); kept in exchange for the lane-dense [tq, D]
        # output tile (the larger measured lever).
        q = q_ref[0, 0, :, h * dh:(h + 1) * dh]
        k = k_ref[0, 0, :, h * dh:(h + 1) * dh]
        v = v_ref[0, 0, :, h * dh:(h + 1) * dh]

        s = jax.lax.dot_general(q, k, (((1,), (1,)), ((), ())),
                                preferred_element_type=jnp.float32)
        s = s * scale + bias                   # (tq, tkv)

        m_prev = m_sc[h]                       # (tq, 1)
        m_new = jnp.maximum(m_prev, jnp.max(s, axis=-1, keepdims=True))
        alpha = jnp.exp(m_prev - m_new)
        p = jnp.exp(s - m_new)                 # f32 (safe on all generations)
        l_sc[h] = alpha * l_sc[h] + jnp.sum(p, axis=-1, keepdims=True)
        acc_sc[h] = alpha * acc_sc[h] + jnp.dot(
            p.astype(v.dtype), v, preferred_element_type=jnp.float32)
        m_sc[h] = m_new

    @pl.when(kvi == pl.num_programs(2) - 1)
    def _():
        outs = []
        for h in range(heads):
            # defensive floor: a fully-masked row leaves l == 0
            inv = pl.reciprocal(jnp.maximum(l_sc[h], 1e-20), approx=True)
            outs.append(acc_sc[h] * inv)       # (tq, dh)
        o_ref[0] = jnp.concatenate(outs, axis=-1).astype(o_ref.dtype)


# ----------------------------- kernel wrappers ------------------------------


def linear(x, w, b, *, activation=None, out_dtype=None, tm=512):
    """y = x @ W + b (+GELU). Full [Din,Dout] weight VMEM-resident (constant
    index_map -> DMA'd once); grid over row tiles only."""
    n, din = x.shape
    dout = w.shape[1]
    out_dtype = out_dtype or x.dtype
    tm = _pick_tile(n, tm, 16)                 # bf16 sublane packing
    return pl.pallas_call(
        functools.partial(_linear_kernel, activation=activation),
        out_shape=jax.ShapeDtypeStruct((n, dout), out_dtype),
        grid=(n // tm,),
        in_specs=[
            pl.BlockSpec((tm, din), lambda i: (i, 0)),
            pl.BlockSpec((din, dout), lambda i: (0, 0)),   # resident weight
            pl.BlockSpec((1, dout), lambda i: (0, 0)),
        ],
        out_specs=pl.BlockSpec((tm, dout), lambda i: (i, 0)),
        compiler_params=_cparams(("parallel",)),
    )(x, w, b.reshape(1, dout))


def linear_qkv(x, w3, b3, *, out_dtype=None, tm=512):
    """Fused QKV projection. w3:[3,Din,D] stacked; the panel axis is the OUTER
    grid axis so each weight panel is DMA'd once across all row tiles."""
    n, din = x.shape
    d = w3.shape[2]
    out_dtype = out_dtype or x.dtype
    tm = _pick_tile(n, tm, 16)
    return pl.pallas_call(
        _linear_qkv_kernel,
        out_shape=jax.ShapeDtypeStruct((3, n, d), out_dtype),
        grid=(3, n // tm),
        in_specs=[
            pl.BlockSpec((tm, din), lambda p, i: (i, 0)),
            pl.BlockSpec((1, din, d), lambda p, i: (p, 0, 0)),
            pl.BlockSpec((1, 1, d), lambda p, i: (p, 0, 0)),
        ],
        out_specs=pl.BlockSpec((1, tm, d), lambda p, i: (p, i, 0)),
        compiler_params=_cparams(("parallel", "parallel")),
    )(x, w3, b3)


def linear_add_layernorm(x, w, b, residual, gamma, beta, *, out_dtype=None,
                         tm=512):
    """y = LayerNorm(x @ W + b + residual). Full-K, full-row (LN needs Dout)."""
    n, din = x.shape
    dout = w.shape[1]
    out_dtype = out_dtype or x.dtype
    tm = _pick_tile(n, tm, 16)
    return pl.pallas_call(
        _linear_ln_kernel,
        out_shape=jax.ShapeDtypeStruct((n, dout), out_dtype),
        grid=(n // tm,),
        in_specs=[
            pl.BlockSpec((tm, din), lambda i: (i, 0)),
            pl.BlockSpec((din, dout), lambda i: (0, 0)),   # resident weight
            pl.BlockSpec((1, dout), lambda i: (0, 0)),
            pl.BlockSpec((tm, dout), lambda i: (i, 0)),    # residual (epilogue)
            pl.BlockSpec((1, dout), lambda i: (0, 0)),     # gamma
            pl.BlockSpec((1, dout), lambda i: (0, 0)),     # beta
        ],
        out_specs=pl.BlockSpec((tm, dout), lambda i: (i, 0)),
        compiler_params=_cparams(("parallel",)),
    )(x, w, b.reshape(1, dout), residual, gamma, beta)


def layernorm(x, gamma, beta, *, out_dtype, tm=512):
    """Row-tiled LayerNorm (no residual) for the embedding stage."""
    n, d = x.shape
    tm = _pick_tile(n, tm, 16)
    return pl.pallas_call(
        _layernorm_kernel,
        out_shape=jax.ShapeDtypeStruct((n, d), out_dtype),
        grid=(n // tm,),
        in_specs=[
            pl.BlockSpec((tm, d), lambda i: (i, 0)),
            pl.BlockSpec((1, d), lambda i: (0, 0)),
            pl.BlockSpec((1, d), lambda i: (0, 0)),
        ],
        out_specs=pl.BlockSpec((tm, d), lambda i: (i, 0)),
        compiler_params=_cparams(("parallel",)),
    )(x, gamma, beta)


def flash_attention(qkv3, mask_bias, *, heads, dh, scale, out_dtype,
                    tq=256, tkv=512):
    """qkv3:[3,B,S,D] stacked Q/K/V panels, mask_bias:[B,1,S] -> [B,S,D]."""
    _, b, s, d = qkv3.shape
    tq = _pick_tile(s, tq, 16)
    tkv = _pick_tile(s, tkv, 16)
    grid = (b, s // tq, s // tkv)
    # qkv3 is passed three times; each stream's BlockSpec selects only its own
    # D-wide panel (block index 0/1/2 on the stacked axis) -> no 3D-wide DMA.
    return pl.pallas_call(
        functools.partial(_flash_attn_kernel, heads=heads, dh=dh, scale=scale),
        out_shape=jax.ShapeDtypeStruct((b, s, d), out_dtype),
        grid=grid,
        in_specs=[
            pl.BlockSpec((1, 1, tq, d), lambda bb, qi, ki: (0, bb, qi, 0)),
            pl.BlockSpec((1, 1, tkv, d), lambda bb, qi, ki: (1, bb, ki, 0)),
            pl.BlockSpec((1, 1, tkv, d), lambda bb, qi, ki: (2, bb, ki, 0)),
            pl.BlockSpec((1, 1, tkv), lambda bb, qi, ki: (bb, 0, ki)),
        ],
        out_specs=pl.BlockSpec((1, tq, d), lambda bb, qi, ki: (bb, qi, 0)),
        scratch_shapes=[
            pltpu.VMEM((heads, tq, 1), jnp.float32),    # m
            pltpu.VMEM((heads, tq, 1), jnp.float32),    # l
            pltpu.VMEM((heads, tq, dh), jnp.float32),   # acc
        ],
        compiler_params=_cparams(("parallel", "parallel", "arbitrary")),
    )(qkv3, qkv3, qkv3, mask_bias)


# --------------------------- parameters (synthetic) --------------------------


def init_params(key, cfg):
    d, ff = cfg["hidden"], cfg["intermediate"]
    std = 0.02

    def nrm(k, shape):
        return std * jax.random.normal(k, shape, dtype=jnp.float32)

    keys = jax.random.split(key, 4 + cfg["layers"])
    params = {
        "word_emb": nrm(keys[0], (cfg["vocab"], d)),
        "pos_emb": nrm(keys[1], (cfg["max_pos"], d)),
        "type_emb": nrm(keys[2], (cfg["type_vocab"], d)),
        "emb_ln_g": jnp.ones((1, d), jnp.float32),
        "emb_ln_b": jnp.zeros((1, d), jnp.float32),
        "fc_w": nrm(keys[3], (d, cfg["output_size"])),
        "fc_b": jnp.zeros((cfg["output_size"],), jnp.float32),
        "layers": [],
    }
    for li in range(cfg["layers"]):
        lk = jax.random.split(keys[4 + li], 6)
        wq, wk, wv = nrm(lk[0], (d, d)), nrm(lk[1], (d, d)), nrm(lk[2], (d, d))
        params["layers"].append({
            # stacked QKV weight [3, D, D]: one resident panel per grid step
            "wqkv": jnp.stack([wq, wk, wv], axis=0),
            "bqkv": jnp.zeros((3, 1, d), jnp.float32),
            "wo": nrm(lk[3], (d, d)), "bo": jnp.zeros((d,), jnp.float32),
            "ln1_g": jnp.ones((1, d), jnp.float32),
            "ln1_b": jnp.zeros((1, d), jnp.float32),
            "w1": nrm(lk[4], (d, ff)), "b1": jnp.zeros((ff,), jnp.float32),
            "w2": nrm(lk[5], (ff, d)), "b2": jnp.zeros((d,), jnp.float32),
            "ln2_g": jnp.ones((1, d), jnp.float32),
            "ln2_b": jnp.zeros((1, d), jnp.float32),
        })
    return params


# ------------------------------- forward pass --------------------------------


def bert_classifier_forward(params, input_ids, attention_mask, cfg):
    b, s = input_ids.shape
    d, h = cfg["hidden"], cfg["heads"]
    dh = d // h
    bf16 = jnp.bfloat16

    # --- embeddings (gather / broadcast-add is XLA glue; LN is a kernel) ---
    word = jnp.take(params["word_emb"], input_ids, axis=0)        # (B,S,D)
    pos = params["pos_emb"][:s][None, :, :]                       # (1,S,D)
    typ = params["type_emb"][0][None, None, :]                    # token_type_ids = 0
    # bf16 handoff halves the embedding-LN HBM read; LN stats are f32 in-kernel
    emb = (word + pos + typ).reshape(b * s, d).astype(bf16)
    hs = layernorm(emb, params["emb_ln_g"], params["emb_ln_b"], out_dtype=bf16)

    # additive attention-mask bias: 0 where attended, -1e9 where masked
    mask_bias = ((1.0 - attention_mask.astype(jnp.float32)) * -1e9)[:, None, :]
    scale = 1.0 / float(dh) ** 0.5

    for layer in params["layers"]:
        # fused QKV projection -> stacked (3, B*S, D), weight panels read once
        qkv3 = linear_qkv(hs, layer["wqkv"].astype(bf16), layer["bqkv"],
                          out_dtype=bf16)
        ctx = flash_attention(qkv3.reshape(3, b, s, d), mask_bias,
                              heads=h, dh=dh, scale=scale,
                              out_dtype=bf16)                     # (B,S,D) lane-dense
        ctx = ctx.reshape(b * s, d)
        # attention out-proj with fused residual-add + LayerNorm epilogue
        hs = linear_add_layernorm(ctx, layer["wo"].astype(bf16), layer["bo"],
                                  hs, layer["ln1_g"], layer["ln1_b"],
                                  out_dtype=bf16)
        # FFN: w1 with fused bias+GELU, w2 with fused residual-add + LayerNorm
        ff = linear(hs, layer["w1"].astype(bf16), layer["b1"],
                    activation="gelu", out_dtype=bf16)
        hs = linear_add_layernorm(ff, layer["w2"].astype(bf16), layer["b2"],
                                  hs, layer["ln2_g"], layer["ln2_b"],
                                  out_dtype=bf16)

    cls = hs.reshape(b, s, d)[:, 0, :]                            # (B, D)
    # dropout(p=0.3): identity at inference time
    logits = linear(cls, params["fc_w"].astype(bf16), params["fc_b"],
                    out_dtype=jnp.float32)                        # (B, output_size)
    return logits


# ----------------------------------- main ------------------------------------

if __name__ == "__main__":
    cfg = dict(vocab=100, hidden=32, heads=2, intermediate=64,
               layers=2, max_pos=16, type_vocab=2, output_size=2)
    B, S = 2, 8

    key = jax.random.PRNGKey(0)
    k_params, k_ids = jax.random.split(key)
    params = init_params(k_params, cfg)

    input_ids = jax.random.randint(k_ids, (B, S), 0, cfg["vocab"], dtype=jnp.int32)
    attention_mask = jnp.array(
        [[1, 1, 1, 1, 1, 1, 1, 1],
         [1, 1, 1, 1, 1, 0, 0, 0]], dtype=jnp.int32)

    fwd = jax.jit(functools.partial(bert_classifier_forward, cfg=cfg))
    logits = jax.block_until_ready(fwd(params, input_ids, attention_mask))
    assert logits.shape == (B, cfg["output_size"])
    print("KERNEL_OK")
</pallas_src>

<mosaic_0001>
module attributes {stable_mosaic.version = 11 : i64} {
  func.func @_layernorm_kernel(%arg0: i32, %arg1: memref<16x32xbf16, #tpu.memory_space<vmem>>, %arg2: memref<1x32xf32, #tpu.memory_space<vmem>>, %arg3: memref<1x32xf32, #tpu.memory_space<vmem>>, %arg4: memref<16x32xbf16, #tpu.memory_space<vmem>>) attributes {dimension_semantics = [#tpu.dimension_semantics<parallel>], iteration_bounds = array<i64: 1>, scalar_prefetch = 0 : i64, scratch_operands = 0 : i64, tpu.core_type = #tpu.core_type<tc>, window_params = [{transform_indices = @transform_0, window_bounds = array<i64: 16, 32>}, {pipeline_mode = #tpu.pipeline_mode<synchronous>, transform_indices = @transform_1, window_bounds = array<i64: 1, 32>}, {pipeline_mode = #tpu.pipeline_mode<synchronous>, transform_indices = @transform_2, window_bounds = array<i64: 1, 32>}, {transform_indices = @transform_3, window_bounds = array<i64: 16, 32>}]} {
    %c0 = arith.constant 0 : index
    %c0_0 = arith.constant 0 : index
    %0 = vector.load %arg1[%c0, %c0_0] : memref<16x32xbf16, #tpu.memory_space<vmem>>, vector<16x32xbf16>
    %1 = arith.extf %0 : vector<16x32xbf16> to vector<16x32xf32>
    %cst = arith.constant dense<0.000000e+00> : vector<16xf32>
    %2 = vector.multi_reduction <add>, %1, %cst [1] : vector<16x32xf32> to vector<16xf32>
    %3 = vector.shape_cast %2 : vector<16xf32> to vector<16x1xf32>
    %cst_1 = arith.constant 3.200000e+01 : f32
    %4 = vector.broadcast %cst_1 : f32 to vector<16x1xf32>
    %5 = arith.divf %3, %4 : vector<16x1xf32>
    %6 = vector.broadcast %5 : vector<16x1xf32> to vector<16x32xf32>
    %7 = arith.subf %1, %6 : vector<16x32xf32>
    %8 = vector.broadcast %5 : vector<16x1xf32> to vector<16x32xf32>
    %9 = arith.subf %1, %8 : vector<16x32xf32>
    %10 = arith.mulf %7, %9 : vector<16x32xf32>
    %cst_2 = arith.constant dense<0.000000e+00> : vector<16xf32>
    %11 = vector.multi_reduction <add>, %10, %cst_2 [1] : vector<16x32xf32> to vector<16xf32>
    %12 = vector.shape_cast %11 : vector<16xf32> to vector<16x1xf32>
    %cst_3 = arith.constant 3.200000e+01 : f32
    %13 = vector.broadcast %cst_3 : f32 to vector<16x1xf32>
    %14 = arith.divf %12, %13 : vector<16x1xf32>
    %15 = vector.broadcast %5 : vector<16x1xf32> to vector<16x32xf32>
    %16 = arith.subf %1, %15 : vector<16x32xf32>
    %cst_4 = arith.constant 9.99999996E-13 : f32
    %17 = vector.broadcast %cst_4 : f32 to vector<16x1xf32>
    %18 = arith.addf %14, %17 : vector<16x1xf32>
    %19 = math.rsqrt %18 : vector<16x1xf32>
    %20 = vector.broadcast %19 : vector<16x1xf32> to vector<16x32xf32>
    %21 = arith.mulf %16, %20 : vector<16x32xf32>
    %c0_5 = arith.constant 0 : index
    %c0_6 = arith.constant 0 : index
    %22 = vector.load %arg2[%c0_5, %c0_6] : memref<1x32xf32, #tpu.memory_space<vmem>>, vector<1x32xf32>
    %23 = vector.broadcast %22 : vector<1x32xf32> to vector<16x32xf32>
    %24 = arith.mulf %21, %23 : vector<16x32xf32>
    %c0_7 = arith.constant 0 : index
    %c0_8 = arith.constant 0 : index
    %25 = vector.load %arg3[%c0_7, %c0_8] : memref<1x32xf32, #tpu.memory_space<vmem>>, vector<1x32xf32>
    %26 = vector.broadcast %25 : vector<1x32xf32> to vector<16x32xf32>
    %27 = arith.addf %24, %26 : vector<16x32xf32>
    %28 = arith.truncf %27 : vector<16x32xf32> to vector<16x32xbf16>
    %c0_9 = arith.constant 0 : index
    %c0_10 = arith.constant 0 : index
    %29 = vector.load %arg4[%c0_9, %c0_10] : memref<16x32xbf16, #tpu.memory_space<vmem>>, vector<16x32xbf16>
    tpu.vector_store %arg4[%c0_9, %c0_10], %28 {strides = array<i32>} : memref<16x32xbf16, #tpu.memory_space<vmem>>, vector<16x32xbf16>,
    return
  }
  func.func @transform_0(%arg0: i32) -> (i32, i32) {
    %c0_i32 = arith.constant 0 : i32
    %c0_i32_0 = arith.constant 0 : i32
    return %arg0, %c0_i32 : i32, i32
  }
  func.func @transform_1(%arg0: i32) -> (i32, i32) {
    %c0_i32 = arith.constant 0 : i32
    %c0_i32_0 = arith.constant 0 : i32
    %c0_i32_1 = arith.constant 0 : i32
    return %c0_i32, %c0_i32_0 : i32, i32
  }
  func.func @transform_2(%arg0: i32) -> (i32, i32) {
    %c0_i32 = arith.constant 0 : i32
    %c0_i32_0 = arith.constant 0 : i32
    %c0_i32_1 = arith.constant 0 : i32
    return %c0_i32, %c0_i32_0 : i32, i32
  }
  func.func @transform_3(%arg0: i32) -> (i32, i32) {
    %c0_i32 = arith.constant 0 : i32
    %c0_i32_0 = arith.constant 0 : i32
    return %arg0, %c0_i32 : i32, i32
  }
}

module attributes {stable_mosaic.version = 11 : i64} {
  func.func @_linear_qkv_kernel(%arg0: i32, %arg1: i32, %arg2: memref<16x32xbf16, #tpu.memory_space<vmem>>, %arg3: memref<1x32x32xbf16, #tpu.memory_space<vmem>>, %arg4: memref<1x1x32xf32, #tpu.memory_space<vmem>>, %arg5: memref<1x16x32xbf16, #tpu.memory_space<vmem>>) attributes {dimension_semantics = [#tpu.dimension_semantics<parallel>, #tpu.dimension_semantics<parallel>], iteration_bounds = array<i64: 3, 1>, scalar_prefetch = 0 : i64, scratch_operands = 0 : i64, tpu.core_type = #tpu.core_type<tc>, window_params = [{transform_indices = @transform_0, window_bounds = array<i64: 16, 32>}, {transform_indices = @transform_1, window_bounds = array<i64: 1, 32, 32>}, {transform_indices = @transform_2, window_bounds = array<i64: 1, 1, 32>}, {transform_indices = @transform_3, window_bounds = array<i64: 1, 16, 32>}]} {
    %c0 = arith.constant 0 : index
    %c0_0 = arith.constant 0 : index
    %0 = vector.load %arg2[%c0, %c0_0] : memref<16x32xbf16, #tpu.memory_space<vmem>>, vector<16x32xbf16>
    %c0_1 = arith.constant 0 : index
    %c0_2 = arith.constant 0 : index
    %c0_3 = arith.constant 0 : index
    %1 = vector.load %arg3[%c0_1, %c0_2, %c0_3] : memref<1x32x32xbf16, #tpu.memory_space<vmem>>, vector<1x32x32xbf16>
    %2 = vector.shape_cast %1 : vector<1x32x32xbf16> to vector<32x32xbf16>
    %cst = arith.constant dense<0.000000e+00> : vector<16x32xf32>
    %3 = tpu.matmul %0, %2, %cst {dimension_numbers = #tpu.dot_dimension_numbers<[1], [0], [0], [1], [0, 0, 1, 1], [], []>} : vector<16x32xbf16>, vector<32x32xbf16>, vector<16x32xf32> -> vector<16x32xf32>
    %c0_4 = arith.constant 0 : index
    %c0_5 = arith.constant 0 : index
    %c0_6 = arith.constant 0 : index
    %4 = vector.load %arg4[%c0_4, %c0_5, %c0_6] : memref<1x1x32xf32, #tpu.memory_space<vmem>>, vector<1x1x32xf32>
    %5 = vector.shape_cast %4 : vector<1x1x32xf32> to vector<1x32xf32>
    %6 = vector.broadcast %5 : vector<1x32xf32> to vector<16x32xf32>
    %7 = arith.addf %3, %6 : vector<16x32xf32>
    %8 = arith.truncf %7 : vector<16x32xf32> to vector<16x32xbf16>
    %c0_7 = arith.constant 0 : index
    %c0_8 = arith.constant 0 : index
    %c0_9 = arith.constant 0 : index
    %9 = vector.load %arg5[%c0_7, %c0_8, %c0_9] : memref<1x16x32xbf16, #tpu.memory_space<vmem>>, vector<1x16x32xbf16>
    %10 = vector.shape_cast %9 : vector<1x16x32xbf16> to vector<16x32xbf16>
    %11 = vector.shape_cast %8 : vector<16x32xbf16> to vector<1x16x32xbf16>
    tpu.vector_store %arg5[%c0_7, %c0_8, %c0_9], %11 {strides = array<i32>} : memref<1x16x32xbf16, #tpu.memory_space<vmem>>, vector<1x16x32xbf16>,
    return
  }
  func.func @transform_0(%arg0: i32, %arg1: i32) -> (i32, i32) {
    %c0_i32 = arith.constant 0 : i32
    %c0_i32_0 = arith.constant 0 : i32
    return %arg1, %c0_i32 : i32, i32
  }
  func.func @transform_1(%arg0: i32, %arg1: i32) -> (i32, i32, i32) {
    %c0_i32 = arith.constant 0 : i32
    %c0_i32_0 = arith.constant 0 : i32
    %c0_i32_1 = arith.constant 0 : i32
    return %arg0, %c0_i32, %c0_i32_0 : i32, i32, i32
  }
  func.func @transform_2(%arg0: i32, %arg1: i32) -> (i32, i32, i32) {
    %c0_i32 = arith.constant 0 : i32
    %c0_i32_0 = arith.constant 0 : i32
    %c0_i32_1 = arith.constant 0 : i32
    return %arg0, %c0_i32, %c0_i32_0 : i32, i32, i32
  }
  func.func @transform_3(%arg0: i32, %arg1: i32) -> (i32, i32, i32) {
    %c0_i32 = arith.constant 0 : i32
    %c0_i32_0 = arith.constant 0 : i32
    return %arg0, %arg1, %c0_i32 : i32, i32, i32
  }
}

module attributes {stable_mosaic.version = 11 : i64} {
  func.func @_linear_ln_kernel(%arg0: i32, %arg1: memref<16x32xbf16, #tpu.memory_space<vmem>>, %arg2: memref<32x32xbf16, #tpu.memory_space<vmem>>, %arg3: memref<1x32xf32, #tpu.memory_space<vmem>>, %arg4: memref<16x32xbf16, #tpu.memory_space<vmem>>, %arg5: memref<1x32xf32, #tpu.memory_space<vmem>>, %arg6: memref<1x32xf32, #tpu.memory_space<vmem>>, %arg7: memref<16x32xbf16, #tpu.memory_space<vmem>>) attributes {dimension_semantics = [#tpu.dimension_semantics<parallel>], iteration_bounds = array<i64: 1>, scalar_prefetch = 0 : i64, scratch_operands = 0 : i64, tpu.core_type = #tpu.core_type<tc>, window_params = [{transform_indices = @transform_0, window_bounds = array<i64: 16, 32>}, {pipeline_mode = #tpu.pipeline_mode<synchronous>, transform_indices = @transform_1, window_bounds = array<i64: 32, 32>}, {pipeline_mode = #tpu.pipeline_mode<synchronous>, transform_indices = @transform_2, window_bounds = array<i64: 1, 32>}, {transform_indices = @transform_3, window_bounds = array<i64: 16, 32>}, {pipeline_mode = #tpu.pipeline_mode<synchronous>, transform_indices = @transform_4, window_bounds = array<i64: 1, 32>}, {pipeline_mode = #tpu.pipeline_mode<synchronous>, transform_indices = @transform_5, window_bounds = array<i64: 1, 32>}, {transform_indices = @transform_6, window_bounds = array<i64: 16, 32>}]} {
    %c0 = arith.constant 0 : index
    %c0_0 = arith.constant 0 : index
    %0 = vector.load %arg1[%c0, %c0_0] : memref<16x32xbf16, #tpu.memory_space<vmem>>, vector<16x32xbf16>
    %c0_1 = arith.constant 0 : index
    %c0_2 = arith.constant 0 : index
    %1 = vector.load %arg2[%c0_1, %c0_2] : memref<32x32xbf16, #tpu.memory_space<vmem>>, vector<32x32xbf16>
    %cst = arith.constant dense<0.000000e+00> : vector<16x32xf32>
    %2 = tpu.matmul %0, %1, %cst {dimension_numbers = #tpu.dot_dimension_numbers<[1], [0], [0], [1], [0, 0, 1, 1], [], []>} : vector<16x32xbf16>, vector<32x32xbf16>, vector<16x32xf32> -> vector<16x32xf32>
    %c0_3 = arith.constant 0 : index
    %c0_4 = arith.constant 0 : index
    %3 = vector.load %arg3[%c0_3, %c0_4] : memref<1x32xf32, #tpu.memory_space<vmem>>, vector<1x32xf32>
    %4 = vector.broadcast %3 : vector<1x32xf32> to vector<16x32xf32>
    %5 = arith.addf %2, %4 : vector<16x32xf32>
    %c0_5 = arith.constant 0 : index
    %c0_6 = arith.constant 0 : index
    %6 = vector.load %arg4[%c0_5, %c0_6] : memref<16x32xbf16, #tpu.memory_space<vmem>>, vector<16x32xbf16>
    %7 = arith.extf %6 : vector<16x32xbf16> to vector<16x32xf32>
    %8 = arith.addf %5, %7 : vector<16x32xf32>
    %cst_7 = arith.constant dense<0.000000e+00> : vector<16xf32>
    %9 = vector.multi_reduction <add>, %8, %cst_7 [1] : vector<16x32xf32> to vector<16xf32>
    %10 = vector.shape_cast %9 : vector<16xf32> to vector<16x1xf32>
    %cst_8 = arith.constant 3.200000e+01 : f32
    %11 = vector.broadcast %cst_8 : f32 to vector<16x1xf32>
    %12 = arith.divf %10, %11 : vector<16x1xf32>
    %13 = vector.broadcast %12 : vector<16x1xf32> to vector<16x32xf32>
    %14 = arith.subf %8, %13 : vector<16x32xf32>
    %15 = vector.broadcast %12 : vector<16x1xf32> to vector<16x32xf32>
    %16 = arith.subf %8, %15 : vector<16x32xf32>
    %17 = arith.mulf %14, %16 : vector<16x32xf32>
    %cst_9 = arith.constant dense<0.000000e+00> : vector<16xf32>
    %18 = vector.multi_reduction <add>, %17, %cst_9 [1] : vector<16x32xf32> to vector<16xf32>
    %19 = vector.shape_cast %18 : vector<16xf32> to vector<16x1xf32>
    %cst_10 = arith.constant 3.200000e+01 : f32
    %20 = vector.broadcast %cst_10 : f32 to vector<16x1xf32>
    %21 = arith.divf %19, %20 : vector<16x1xf32>
    %22 = vector.broadcast %12 : vector<16x1xf32> to vector<16x32xf32>
    %23 = arith.subf %8, %22 : vector<16x32xf32>
    %cst_11 = arith.constant 9.99999996E-13 : f32
    %24 = vector.broadcast %cst_11 : f32 to vector<16x1xf32>
    %25 = arith.addf %21, %24 : vector<16x1xf32>
    %26 = math.rsqrt %25 : vector<16x1xf32>
    %27 = vector.broadcast %26 : vector<16x1xf32> to vector<16x32xf32>
    %28 = arith.mulf %23, %27 : vector<16x32xf32>
    %c0_12 = arith.constant 0 : index
    %c0_13 = arith.constant 0 : index
    %29 = vector.load %arg5[%c0_12, %c0_13] : memref<1x32xf32, #tpu.memory_space<vmem>>, vector<1x32xf32>
    %30 = vector.broadcast %29 : vector<1x32xf32> to vector<16x32xf32>
    %31 = arith.mulf %28, %30 : vector<16x32xf32>
    %c0_14 = arith.constant 0 : index
    %c0_15 = arith.constant 0 : index
    %32 = vector.load %arg6[%c0_14, %c0_15] : memref<1x32xf32, #tpu.memory_space<vmem>>, vector<1x32xf32>
    %33 = vector.broadcast %32 : vector<1x32xf32> to vector<16x32xf32>
    %34 = arith.addf %31, %33 : vector<16x32xf32>
    %35 = arith.truncf %34 : vector<16x32xf32> to vector<16x32xbf16>
    %c0_16 = arith.constant 0 : index
    %c0_17 = arith.constant 0 : index
    %36 = vector.load %arg7[%c0_16, %c0_17] : memref<16x32xbf16, #tpu.memory_space<vmem>>, vector<16x32xbf16>
    tpu.vector_store %arg7[%c0_16, %c0_17], %35 {strides = array<i32>} : memref<16x32xbf16, #tpu.memory_space<vmem>>, vector<16x32xbf16>,
    return
  }
  func.func @transform_0(%arg0: i32) -> (i32, i32) {
    %c0_i32 = arith.constant 0 : i32
    %c0_i32_0 = arith.constant 0 : i32
    return %arg0, %c0_i32 : i32, i32
  }
  func.func @transform_1(%arg0: i32) -> (i32, i32) {
    %c0_i32 = arith.constant 0 : i32
    %c0_i32_0 = arith.constant 0 : i32
    %c0_i32_1 = arith.constant 0 : i32
    return %c0_i32, %c0_i32_0 : i32, i32
  }
  func.func @transform_2(%arg0: i32) -> (i32, i32) {
    %c0_i32 = arith.constant 0 : i32
    %c0_i32_0 = arith.constant 0 : i32
    %c0_i32_1 = arith.constant 0 : i32
    return %c0_i32, %c0_i32_0 : i32, i32
  }
  func.func @transform_3(%arg0: i32) -> (i32, i32) {
    %c0_i32 = arith.constant 0 : i32
    %c0_i32_0 = arith.constant 0 : i32
    return %arg0, %c0_i32 : i32, i32
  }
  func.func @transform_4(%arg0: i32) -> (i32, i32) {
    %c0_i32 = arith.constant 0 : i32
    %c0_i32_0 = arith.constant 0 : i32
    %c0_i32_1 = arith.constant 0 : i32
    return %c0_i32, %c0_i32_0 : i32, i32
  }
  func.func @transform_5(%arg0: i32) -> (i32, i32) {
    %c0_i32 = arith.constant 0 : i32
    %c0_i32_0 = arith.constant 0 : i32
    %c0_i32_1 = arith.constant 0 : i32
    return %c0_i32, %c0_i32_0 : i32, i32
  }
  func.func @transform_6(%arg0: i32) -> (i32, i32) {
    %c0_i32 = arith.constant 0 : i32
    %c0_i32_0 = arith.constant 0 : i32
    return %arg0, %c0_i32 : i32, i32
  }
}

module attributes {stable_mosaic.version = 11 : i64} {
  func.func @_flash_attn_kernel(%arg0: i32, %arg1: i32, %arg2: i32, %arg3: memref<1x1x8x32xbf16, #tpu.memory_space<vmem>>, %arg4: memref<1x1x8x32xbf16, #tpu.memory_space<vmem>>, %arg5: memref<1x1x8x32xbf16, #tpu.memory_space<vmem>>, %arg6: memref<1x1x8xf32, #tpu.memory_space<vmem>>, %arg7: memref<1x8x32xbf16, #tpu.memory_space<vmem>>, %arg8: memref<2x8x1xf32, #tpu.memory_space<vmem>>, %arg9: memref<2x8x1xf32, #tpu.memory_space<vmem>>, %arg10: memref<2x8x16xf32, #tpu.memory_space<vmem>>) attributes {dimension_semantics = [#tpu.dimension_semantics<parallel>, #tpu.dimension_semantics<parallel>, #tpu.dimension_semantics<arbitrary>], iteration_bounds = array<i64: 2, 1, 1>, scalar_prefetch = 0 : i64, scratch_operands = 3 : i64, tpu.core_type = #tpu.core_type<tc>, window_params = [{transform_indices = @transform_0, window_bounds = array<i64: 1, 1, 8, 32>}, {transform_indices = @transform_1, window_bounds = array<i64: 1, 1, 8, 32>}, {transform_indices = @transform_2, window_bounds = array<i64: 1, 1, 8, 32>}, {transform_indices = @transform_3, window_bounds = array<i64: 1, 1, 8>}, {transform_indices = @transform_4, window_bounds = array<i64: 1, 8, 32>}]} {
    %c0_i32 = arith.constant 0 : i32
    %0 = arith.cmpi eq, %arg2, %c0_i32 : i32
    %1 = arith.extui %0 : i1 to i32
    %c0_i32_0 = arith.constant 0 : i32
    %2 = arith.cmpi ne, %1, %c0_i32_0 : i32
    scf.if %2 {
      %cst_72 = arith.constant 0xFF800000 : f32
      %94 = vector.broadcast %cst_72 : f32 to vector<2x8x1xf32>
      %c0_73 = arith.constant 0 : index
      %c0_74 = arith.constant 0 : index
      %c0_75 = arith.constant 0 : index
      %95 = vector.load %arg8[%c0_73, %c0_74, %c0_75] : memref<2x8x1xf32, #tpu.memory_space<vmem>>, vector<2x8x1xf32>
      tpu.vector_store %arg8[%c0_73, %c0_74, %c0_75], %94 {strides = array<i32>} : memref<2x8x1xf32, #tpu.memory_space<vmem>>, vector<2x8x1xf32>,
      %cst_76 = arith.constant 0.000000e+00 : f32
      %96 = vector.broadcast %cst_76 : f32 to vector<2x8x1xf32>
      %c0_77 = arith.constant 0 : index
      %c0_78 = arith.constant 0 : index
      %c0_79 = arith.constant 0 : index
      %97 = vector.load %arg9[%c0_77, %c0_78, %c0_79] : memref<2x8x1xf32, #tpu.memory_space<vmem>>, vector<2x8x1xf32>
      tpu.vector_store %arg9[%c0_77, %c0_78, %c0_79], %96 {strides = array<i32>} : memref<2x8x1xf32, #tpu.memory_space<vmem>>, vector<2x8x1xf32>,
      %cst_80 = arith.constant 0.000000e+00 : f32
      %98 = vector.broadcast %cst_80 : f32 to vector<2x8x16xf32>
      %c0_81 = arith.constant 0 : index
      %c0_82 = arith.constant 0 : index
      %c0_83 = arith.constant 0 : index
      %99 = vector.load %arg10[%c0_81, %c0_82, %c0_83] : memref<2x8x16xf32, #tpu.memory_space<vmem>>, vector<2x8x16xf32>
      tpu.vector_store %arg10[%c0_81, %c0_82, %c0_83], %98 {strides = array<i32>} : memref<2x8x16xf32, #tpu.memory_space<vmem>>, vector<2x8x16xf32>,
    } else {
    }
    %c0 = arith.constant 0 : index
    %c0_1 = arith.constant 0 : index
    %c0_2 = arith.constant 0 : index
    %3 = vector.load %arg6[%c0, %c0_1, %c0_2] : memref<1x1x8xf32, #tpu.memory_space<vmem>>, vector<1x1x8xf32>
    %4 = vector.shape_cast %3 : vector<1x1x8xf32> to vector<1x8xf32>
    %c0_3 = arith.constant 0 : index
    %c0_4 = arith.constant 0 : index
    %c0_5 = arith.constant 0 : index
    %c0_6 = arith.constant 0 : index
    %5 = vector.load %arg3[%c0_3, %c0_4, %c0_5, %c0_6] : memref<1x1x8x32xbf16, #tpu.memory_space<vmem>>, vector<1x1x8x16xbf16>
    %6 = vector.shape_cast %5 : vector<1x1x8x16xbf16> to vector<8x16xbf16>
    %c0_7 = arith.constant 0 : index
    %c0_8 = arith.constant 0 : index
    %c0_9 = arith.constant 0 : index
    %c0_10 = arith.constant 0 : index
    %7 = vector.load %arg4[%c0_7, %c0_8, %c0_9, %c0_10] : memref<1x1x8x32xbf16, #tpu.memory_space<vmem>>, vector<1x1x8x16xbf16>
    %8 = vector.shape_cast %7 : vector<1x1x8x16xbf16> to vector<8x16xbf16>
    %c0_11 = arith.constant 0 : index
    %c0_12 = arith.constant 0 : index
    %c0_13 = arith.constant 0 : index
    %c0_14 = arith.constant 0 : index
    %9 = vector.load %arg5[%c0_11, %c0_12, %c0_13, %c0_14] : memref<1x1x8x32xbf16, #tpu.memory_space<vmem>>, vector<1x1x8x16xbf16>
    %10 = vector.shape_cast %9 : vector<1x1x8x16xbf16> to vector<8x16xbf16>
    %cst = arith.constant dense<0.000000e+00> : vector<8x8xf32>
    %11 = tpu.matmul %6, %8, %cst {dimension_numbers = #tpu.dot_dimension_numbers<[1], [1], [0], [0], [0, 0, 1, 0], [], []>} : vector<8x16xbf16>, vector<8x16xbf16>, vector<8x8xf32> -> vector<8x8xf32>
    %cst_15 = arith.constant 2.500000e-01 : f32
    %12 = vector.broadcast %cst_15 : f32 to vector<8x8xf32>
    %13 = arith.mulf %11, %12 : vector<8x8xf32>
    %14 = vector.broadcast %4 : vector<1x8xf32> to vector<8x8xf32>
    %15 = arith.addf %13, %14 : vector<8x8xf32>
    %c0_16 = arith.constant 0 : index
    %c0_17 = arith.constant 0 : index
    %c0_18 = arith.constant 0 : index
    %16 = vector.load %arg8[%c0_16, %c0_17, %c0_18] : memref<2x8x1xf32, #tpu.memory_space<vmem>>, vector<1x8x1xf32>
    %17 = vector.shape_cast %16 : vector<1x8x1xf32> to vector<8x1xf32>
    %cst_19 = arith.constant dense<0xFF800000> : vector<8xf32>
    %18 = vector.multi_reduction <maximumf>, %15, %cst_19 [1] : vector<8x8xf32> to vector<8xf32>
    %19 = vector.shape_cast %18 : vector<8xf32> to vector<8x1xf32>
    %20 = arith.maximumf %17, %19 : vector<8x1xf32>
    %21 = arith.subf %17, %20 : vector<8x1xf32>
    %22 = math.exp %21 : vector<8x1xf32>
    %23 = vector.broadcast %20 : vector<8x1xf32> to vector<8x8xf32>
    %24 = arith.subf %15, %23 : vector<8x8xf32>
    %25 = math.exp %24 : vector<8x8xf32>
    %c0_20 = arith.constant 0 : index
    %c0_21 = arith.constant 0 : index
    %c0_22 = arith.constant 0 : index
    %26 = vector.load %arg9[%c0_20, %c0_21, %c0_22] : memref<2x8x1xf32, #tpu.memory_space<vmem>>, vector<1x8x1xf32>
    %27 = vector.shape_cast %26 : vector<1x8x1xf32> to vector<8x1xf32>
    %28 = arith.mulf %22, %27 : vector<8x1xf32>
    %cst_23 = arith.constant dense<0.000000e+00> : vector<8xf32>
    %29 = vector.multi_reduction <add>, %25, %cst_23 [1] : vector<8x8xf32> to vector<8xf32>
    %30 = vector.shape_cast %29 : vector<8xf32> to vector<8x1xf32>
    %31 = arith.addf %28, %30 : vector<8x1xf32>
    %c0_24 = arith.constant 0 : index
    %c0_25 = arith.constant 0 : index
    %c0_26 = arith.constant 0 : index
    %32 = vector.load %arg9[%c0_24, %c0_25, %c0_26] : memref<2x8x1xf32, #tpu.memory_space<vmem>>, vector<1x8x1xf32>
    %33 = vector.shape_cast %32 : vector<1x8x1xf32> to vector<8x1xf32>
    %34 = vector.shape_cast %31 : vector<8x1xf32> to vector<1x8x1xf32>
    tpu.vector_store %arg9[%c0_24, %c0_25, %c0_26], %34 {strides = array<i32>} : memref<2x8x1xf32, #tpu.memory_space<vmem>>, vector<1x8x1xf32>,
    %c0_27 = arith.constant 0 : index
    %c0_28 = arith.constant 0 : index
    %c0_29 = arith.constant 0 : index
    %35 = vector.load %arg10[%c0_27, %c0_28, %c0_29] : memref<2x8x16xf32, #tpu.memory_space<vmem>>, vector<1x8x16xf32>
    %36 = vector.shape_cast %35 : vector<1x8x16xf32> to vector<8x16xf32>
    %37 = vector.broadcast %22 : vector<8x1xf32> to vector<8x16xf32>
    %38 = arith.mulf %37, %36 : vector<8x16xf32>
    %39 = arith.truncf %25 : vector<8x8xf32> to vector<8x8xbf16>
    %cst_30 = arith.constant dense<0.000000e+00> : vector<8x16xf32>
    %40 = tpu.matmul %39, %10, %cst_30 {dimension_numbers = #tpu.dot_dimension_numbers<[1], [0], [0], [1], [0, 0, 1, 1], [], []>} : vector<8x8xbf16>, vector<8x16xbf16>, vector<8x16xf32> -> vector<8x16xf32>
    %41 = arith.addf %38, %40 : vector<8x16xf32>
    %c0_31 = arith.constant 0 : index
    %c0_32 = arith.constant 0 : index
    %c0_33 = arith.constant 0 : index
    %42 = vector.load %arg10[%c0_31, %c0_32, %c0_33] : memref<2x8x16xf32, #tpu.memory_space<vmem>>, vector<1x8x16xf32>
    %43 = vector.shape_cast %42 : vector<1x8x16xf32> to vector<8x16xf32>
    %44 = vector.shape_cast %41 : vector<8x16xf32> to vector<1x8x16xf32>
    tpu.vector_store %arg10[%c0_31, %c0_32, %c0_33], %44 {strides = array<i32>} : memref<2x8x16xf32, #tpu.memory_space<vmem>>, vector<1x8x16xf32>,
    %c0_34 = arith.constant 0 : index
    %c0_35 = arith.constant 0 : index
    %c0_36 = arith.constant 0 : index
    %45 = vector.load %arg8[%c0_34, %c0_35, %c0_36] : memref<2x8x1xf32, #tpu.memory_space<vmem>>, vector<1x8x1xf32>
    %46 = vector.shape_cast %45 : vector<1x8x1xf32> to vector<8x1xf32>
    %47 = vector.shape_cast %20 : vector<8x1xf32> to vector<1x8x1xf32>
    tpu.vector_store %arg8[%c0_34, %c0_35, %c0_36], %47 {strides = array<i32>} : memref<2x8x1xf32, #tpu.memory_space<vmem>>, vector<1x8x1xf32>,
    %c0_37 = arith.constant 0 : index
    %c0_38 = arith.constant 0 : index
    %c0_39 = arith.constant 0 : index
    %c16 = arith.constant 16 : index
    %48 = vector.load %arg3[%c0_37, %c0_38, %c0_39, %c16] : memref<1x1x8x32xbf16, #tpu.memory_space<vmem>>, vector<1x1x8x16xbf16>
    %49 = vector.shape_cast %48 : vector<1x1x8x16xbf16> to vector<8x16xbf16>
    %c0_40 = arith.constant 0 : index
    %c0_41 = arith.constant 0 : index
    %c0_42 = arith.constant 0 : index
    %c16_43 = arith.constant 16 : index
    %50 = vector.load %arg4[%c0_40, %c0_41, %c0_42, %c16_43] : memref<1x1x8x32xbf16, #tpu.memory_space<vmem>>, vector<1x1x8x16xbf16>
    %51 = vector.shape_cast %50 : vector<1x1x8x16xbf16> to vector<8x16xbf16>
    %c0_44 = arith.constant 0 : index
    %c0_45 = arith.constant 0 : index
    %c0_46 = arith.constant 0 : index
    %c16_47 = arith.constant 16 : index
    %52 = vector.load %arg5[%c0_44, %c0_45, %c0_46, %c16_47] : memref<1x1x8x32xbf16, #tpu.memory_space<vmem>>, vector<1x1x8x16xbf16>
    %53 = vector.shape_cast %52 : vector<1x1x8x16xbf16> to vector<8x16xbf16>
    %cst_48 = arith.constant dense<0.000000e+00> : vector<8x8xf32>
    %54 = tpu.matmul %49, %51, %cst_48 {dimension_numbers = #tpu.dot_dimension_numbers<[1], [1], [0], [0], [0, 0, 1, 0], [], []>} : vector<8x16xbf16>, vector<8x16xbf16>, vector<8x8xf32> -> vector<8x8xf32>
    %cst_49 = arith.constant 2.500000e-01 : f32
    %55 = vector.broadcast %cst_49 : f32 to vector<8x8xf32>
    %56 = arith.mulf %54, %55 : vector<8x8xf32>
    %57 = vector.broadcast %4 : vector<1x8xf32> to vector<8x8xf32>
    %58 = arith.addf %56, %57 : vector<8x8xf32>
    %c1 = arith.constant 1 : index
    %c0_50 = arith.constant 0 : index
    %c0_51 = arith.constant 0 : index
    %59 = vector.load %arg8[%c1, %c0_50, %c0_51] : memref<2x8x1xf32, #tpu.memory_space<vmem>>, vector<1x8x1xf32>
    %60 = vector.shape_cast %59 : vector<1x8x1xf32> to vector<8x1xf32>
    %cst_52 = arith.constant dense<0xFF800000> : vector<8xf32>
    %61 = vector.multi_reduction <maximumf>, %58, %cst_52 [1] : vector<8x8xf32> to vector<8xf32>
    %62 = vector.shape_cast %61 : vector<8xf32> to vector<8x1xf32>
    %63 = arith.maximumf %60, %62 : vector<8x1xf32>
    %64 = arith.subf %60, %63 : vector<8x1xf32>
    %65 = math.exp %64 : vector<8x1xf32>
    %66 = vector.broadcast %63 : vector<8x1xf32> to vector<8x8xf32>
    %67 = arith.subf %58, %66 : vector<8x8xf32>
    %68 = math.exp %67 : vector<8x8xf32>
    %c1_53 = arith.constant 1 : index
    %c0_54 = arith.constant 0 : index
    %c0_55 = arith.constant 0 : index
    %69 = vector.load %arg9[%c1_53, %c0_54, %c0_55] : memref<2x8x1xf32, #tpu.memory_space<vmem>>, vector<1x8x1xf32>
    %70 = vector.shape_cast %69 : vector<1x8x1xf32> to vector<8x1xf32>
    %71 = arith.mulf %65, %70 : vector<8x1xf32>
    %cst_56 = arith.constant dense<0.000000e+00> : vector<8xf32>
    %72 = vector.multi_reduction <add>, %68, %cst_56 [1] : vector<8x8xf32> to vector<8xf32>
    %73 = vector.shape_cast %72 : vector<8xf32> to vector<8x1xf32>
    %74 = arith.addf %71, %73 : vector<8x1xf32>
    %c1_57 = arith.constant 1 : index
    %c0_58 = arith.constant 0 : index
    %c0_59 = arith.constant 0 : index
    %75 = vector.load %arg9[%c1_57, %c0_58, %c0_59] : memref<2x8x1xf32, #tpu.memory_space<vmem>>, vector<1x8x1xf32>
    %76 = vector.shape_cast %75 : vector<1x8x1xf32> to vector<8x1xf32>
    %77 = vector.shape_cast %74 : vector<8x1xf32> to vector<1x8x1xf32>
    tpu.vector_store %arg9[%c1_57, %c0_58, %c0_59], %77 {strides = array<i32>} : memref<2x8x1xf32, #tpu.memory_space<vmem>>, vector<1x8x1xf32>,
    %c1_60 = arith.constant 1 : index
    %c0_61 = arith.constant 0 : index
    %c0_62 = arith.constant 0 : index
    %78 = vector.load %arg10[%c1_60, %c0_61, %c0_62] : memref<2x8x16xf32, #tpu.memory_space<vmem>>, vector<1x8x16xf32>
    %79 = vector.shape_cast %78 : vector<1x8x16xf32> to vector<8x16xf32>
    %80 = vector.broadcast %65 : vector<8x1xf32> to vector<8x16xf32>
    %81 = arith.mulf %80, %79 : vector<8x16xf32>
    %82 = arith.truncf %68 : vector<8x8xf32> to vector<8x8xbf16>
    %cst_63 = arith.constant dense<0.000000e+00> : vector<8x16xf32>
    %83 = tpu.matmul %82, %53, %cst_63 {dimension_numbers = #tpu.dot_dimension_numbers<[1], [0], [0], [1], [0, 0, 1, 1], [], []>} : vector<8x8xbf16>, vector<8x16xbf16>, vector<8x16xf32> -> vector<8x16xf32>
    %84 = arith.addf %81, %83 : vector<8x16xf32>
    %c1_64 = arith.constant 1 : index
    %c0_65 = arith.constant 0 : index
    %c0_66 = arith.constant 0 : index
    %85 = vector.load %arg10[%c1_64, %c0_65, %c0_66] : memref<2x8x16xf32, #tpu.memory_space<vmem>>, vector<1x8x16xf32>
    %86 = vector.shape_cast %85 : vector<1x8x16xf32> to vector<8x16xf32>
    %87 = vector.shape_cast %84 : vector<8x16xf32> to vector<1x8x16xf32>
    tpu.vector_store %arg10[%c1_64, %c0_65, %c0_66], %87 {strides = array<i32>} : memref<2x8x16xf32, #tpu.memory_space<vmem>>, vector<1x8x16xf32>,
    %c1_67 = arith.constant 1 : index
    %c0_68 = arith.constant 0 : index
    %c0_69 = arith.constant 0 : index
    %88 = vector.load %arg8[%c1_67, %c0_68, %c0_69] : memref<2x8x1xf32, #tpu.memory_space<vmem>>, vector<1x8x1xf32>
    %89 = vector.shape_cast %88 : vector<1x8x1xf32> to vector<8x1xf32>
    %90 = vector.shape_cast %63 : vector<8x1xf32> to vector<1x8x1xf32>
    tpu.vector_store %arg8[%c1_67, %c0_68, %c0_69], %90 {strides = array<i32>} : memref<2x8x1xf32, #tpu.memory_space<vmem>>, vector<1x8x1xf32>,
    %c0_i32_70 = arith.constant 0 : i32
    %91 = arith.cmpi eq, %arg2, %c0_i32_70 : i32
    %92 = arith.extui %91 : i1 to i32
    %c0_i32_71 = arith.constant 0 : i32
    %93 = arith.cmpi ne, %92, %c0_i32_71 : i32
    scf.if %93 {
      %c0_72 = arith.constant 0 : index
      %c0_73 = arith.constant 0 : index
      %c0_74 = arith.constant 0 : index
      %94 = vector.load %arg9[%c0_72, %c0_73, %c0_74] : memref<2x8x1xf32, #tpu.memory_space<vmem>>, vector<1x8x1xf32>
      %95 = vector.shape_cast %94 : vector<1x8x1xf32> to vector<8x1xf32>
      %cst_75 = arith.constant 9.99999968E-21 : f32
      %96 = vector.broadcast %cst_75 : f32 to vector<8x1xf32>
      %97 = arith.maximumf %95, %96 : vector<8x1xf32>
      %98 = tpu.reciprocal %97 {approx = true} : vector<8x1xf32> -> vector<8x1xf32>
      %c0_76 = arith.constant 0 : index
      %c0_77 = arith.constant 0 : index
      %c0_78 = arith.constant 0 : index
      %99 = vector.load %arg10[%c0_76, %c0_77, %c0_78] : memref<2x8x16xf32, #tpu.memory_space<vmem>>, vector<1x8x16xf32>
      %100 = vector.shape_cast %99 : vector<1x8x16xf32> to vector<8x16xf32>
      %101 = vector.broadcast %98 : vector<8x1xf32> to vector<8x16xf32>
      %102 = arith.mulf %100, %101 : vector<8x16xf32>
      %c1_79 = arith.constant 1 : index
      %c0_80 = arith.constant 0 : index
      %c0_81 = arith.constant 0 : index
      %103 = vector.load %arg9[%c1_79, %c0_80, %c0_81] : memref<2x8x1xf32, #tpu.memory_space<vmem>>, vector<1x8x1xf32>
      %104 = vector.shape_cast %103 : vector<1x8x1xf32> to vector<8x1xf32>
      %cst_82 = arith.constant 9.99999968E-21 : f32
      %105 = vector.broadcast %cst_82 : f32 to vector<8x1xf32>
      %106 = arith.maximumf %104, %105 : vector<8x1xf32>
      %107 = tpu.reciprocal %106 {approx = true} : vector<8x1xf32> -> vector<8x1xf32>
      %c1_83 = arith.constant 1 : index
      %c0_84 = arith.constant 0 : index
      %c0_85 = arith.constant 0 : index
      %108 = vector.load %arg10[%c1_83, %c0_84, %c0_85] : memref<2x8x16xf32, #tpu.memory_space<vmem>>, vector<1x8x16xf32>
      %109 = vector.shape_cast %108 : vector<1x8x16xf32> to vector<8x16xf32>
      %110 = vector.broadcast %107 : vector<8x1xf32> to vector<8x16xf32>
      %111 = arith.mulf %109, %110 : vector<8x16xf32>
      %112 = tpu.concatenate %102, %111 in 1 : vector<8x16xf32>, vector<8x16xf32> -> vector<8x32xf32>
      %113 = arith.truncf %112 : vector<8x32xf32> to vector<8x32xbf16>
      %c0_86 = arith.constant 0 : index
      %c0_87 = arith.constant 0 : index
      %c0_88 = arith.constant 0 : index
      %114 = vector.load %arg7[%c0_86, %c0_87, %c0_88] : memref<1x8x32xbf16, #tpu.memory_space<vmem>>, vector<1x8x32xbf16>
      %115 = vector.shape_cast %114 : vector<1x8x32xbf16> to vector<8x32xbf16>
      %116 = vector.shape_cast %113 : vector<8x32xbf16> to vector<1x8x32xbf16>
      tpu.vector_store %arg7[%c0_86, %c0_87, %c0_88], %116 {strides = array<i32>} : memref<1x8x32xbf16, #tpu.memory_space<vmem>>, vector<1x8x32xbf16>,
    } else {
    }
    return
  }
  func.func @transform_0(%arg0: i32, %arg1: i32, %arg2: i32) -> (i32, i32, i32, i32) {
    %c0_i32 = arith.constant 0 : i32
    %c0_i32_0 = arith.constant 0 : i32
    %c0_i32_1 = arith.constant 0 : i32
    return %c0_i32, %arg0, %arg1, %c0_i32_0 : i32, i32, i32, i32
  }
  func.func @transform_1(%arg0: i32, %arg1: i32, %arg2: i32) -> (i32, i32, i32, i32) {
    %c1_i32 = arith.constant 1 : i32
    %c0_i32 = arith.constant 0 : i32
    %c0_i32_0 = arith.constant 0 : i32
    return %c1_i32, %arg0, %arg2, %c0_i32 : i32, i32, i32, i32
  }
  func.func @transform_2(%arg0: i32, %arg1: i32, %arg2: i32) -> (i32, i32, i32, i32) {
    %c2_i32 = arith.constant 2 : i32
    %c0_i32 = arith.constant 0 : i32
    %c0_i32_0 = arith.constant 0 : i32
    return %c2_i32, %arg0, %arg2, %c0_i32 : i32, i32, i32, i32
  }
  func.func @transform_3(%arg0: i32, %arg1: i32, %arg2: i32) -> (i32, i32, i32) {
    %c0_i32 = arith.constant 0 : i32
    %c0_i32_0 = arith.constant 0 : i32
    return %arg0, %c0_i32, %arg2 : i32, i32, i32
  }
  func.func @transform_4(%arg0: i32, %arg1: i32, %arg2: i32) -> (i32, i32, i32) {
    %c0_i32 = arith.constant 0 : i32
    %c0_i32_0 = arith.constant 0 : i32
    return %arg0, %arg1, %c0_i32 : i32, i32, i32
  }
}

module attributes {stable_mosaic.version = 11 : i64} {
  func.func @_linear_kernel(%arg0: i32, %arg1: memref<16x32xbf16, #tpu.memory_space<vmem>>, %arg2: memref<32x64xbf16, #tpu.memory_space<vmem>>, %arg3: memref<1x64xf32, #tpu.memory_space<vmem>>, %arg4: memref<16x64xbf16, #tpu.memory_space<vmem>>) attributes {dimension_semantics = [#tpu.dimension_semantics<parallel>], iteration_bounds = array<i64: 1>, scalar_prefetch = 0 : i64, scratch_operands = 0 : i64, tpu.core_type = #tpu.core_type<tc>, window_params = [{transform_indices = @transform_0, window_bounds = array<i64: 16, 32>}, {pipeline_mode = #tpu.pipeline_mode<synchronous>, transform_indices = @transform_1, window_bounds = array<i64: 32, 64>}, {pipeline_mode = #tpu.pipeline_mode<synchronous>, transform_indices = @transform_2, window_bounds = array<i64: 1, 64>}, {transform_indices = @transform_3, window_bounds = array<i64: 16, 64>}]} {
    %c0 = arith.constant 0 : index
    %c0_0 = arith.constant 0 : index
    %0 = vector.load %arg1[%c0, %c0_0] : memref<16x32xbf16, #tpu.memory_space<vmem>>, vector<16x32xbf16>
    %c0_1 = arith.constant 0 : index
    %c0_2 = arith.constant 0 : index
    %1 = vector.load %arg2[%c0_1, %c0_2] : memref<32x64xbf16, #tpu.memory_space<vmem>>, vector<32x64xbf16>
    %cst = arith.constant dense<0.000000e+00> : vector<16x64xf32>
    %2 = tpu.matmul %0, %1, %cst {dimension_numbers = #tpu.dot_dimension_numbers<[1], [0], [0], [1], [0, 0, 1, 1], [], []>} : vector<16x32xbf16>, vector<32x64xbf16>, vector<16x64xf32> -> vector<16x64xf32>
    %c0_3 = arith.constant 0 : index
    %c0_4 = arith.constant 0 : index
    %3 = vector.load %arg3[%c0_3, %c0_4] : memref<1x64xf32, #tpu.memory_space<vmem>>, vector<1x64xf32>
    %4 = vector.broadcast %3 : vector<1x64xf32> to vector<16x64xf32>
    %5 = arith.addf %2, %4 : vector<16x64xf32>
    %cst_5 = arith.constant 5.000000e-01 : f32
    %6 = vector.broadcast %cst_5 : f32 to vector<16x64xf32>
    %7 = arith.mulf %6, %5 : vector<16x64xf32>
    %cst_6 = arith.constant 4.471500e-02 : f32
    %8 = vector.broadcast %cst_6 : f32 to vector<16x64xf32>
    %9 = arith.mulf %8, %5 : vector<16x64xf32>
    %10 = arith.mulf %9, %5 : vector<16x64xf32>
    %11 = arith.mulf %10, %5 : vector<16x64xf32>
    %12 = arith.addf %5, %11 : vector<16x64xf32>
    %cst_7 = arith.constant 0.797884583 : f32
    %13 = vector.broadcast %cst_7 : f32 to vector<16x64xf32>
    %14 = arith.mulf %13, %12 : vector<16x64xf32>
    %15 = math.tanh %14 : vector<16x64xf32>
    %cst_8 = arith.constant 1.000000e+00 : f32
    %16 = vector.broadcast %cst_8 : f32 to vector<16x64xf32>
    %17 = arith.addf %16, %15 : vector<16x64xf32>
    %18 = arith.mulf %7, %17 : vector<16x64xf32>
    %19 = arith.truncf %18 : vector<16x64xf32> to vector<16x64xbf16>
    %c0_9 = arith.constant 0 : index
    %c0_10 = arith.constant 0 : index
    %20 = vector.load %arg4[%c0_9, %c0_10] : memref<16x64xbf16, #tpu.memory_space<vmem>>, vector<16x64xbf16>
    tpu.vector_store %arg4[%c0_9, %c0_10], %19 {strides = array<i32>} : memref<16x64xbf16, #tpu.memory_space<vmem>>, vector<16x64xbf16>,
    return
  }
  func.func @transform_0(%arg0: i32) -> (i32, i32) {
    %c0_i32 = arith.constant 0 : i32
    %c0_i32_0 = arith.constant 0 : i32
    return %arg0, %c0_i32 : i32, i32
  }
  func.func @transform_1(%arg0: i32) -> (i32, i32) {
    %c0_i32 = arith.constant 0 : i32
    %c0_i32_0 = arith.constant 0 : i32
    %c0_i32_1 = arith.constant 0 : i32
    return %c0_i32, %c0_i32_0 : i32, i32
  }
  func.func @transform_2(%arg0: i32) -> (i32, i32) {
    %c0_i32 = arith.constant 0 : i32
    %c0_i32_0 = arith.constant 0 : i32
    %c0_i32_1 = arith.constant 0 : i32
    return %c0_i32, %c0_i32_0 : i32, i32
  }
  func.func @transform_3(%arg0: i32) -> (i32, i32) {
    %c0_i32 = arith.constant 0 : i32
    %c0_i32_0 = arith.constant 0 : i32
    return %arg0, %c0_i32 : i32, i32
  }
}

module attributes {stable_mosaic.version = 11 : i64} {
  func.func @_linear_ln_kernel(%arg0: i32, %arg1: memref<16x64xbf16, #tpu.memory_space<vmem>>, %arg2: memref<64x32xbf16, #tpu.memory_space<vmem>>, %arg3: memref<1x32xf32, #tpu.memory_space<vmem>>, %arg4: memref<16x32xbf16, #tpu.memory_space<vmem>>, %arg5: memref<1x32xf32, #tpu.memory_space<vmem>>, %arg6: memref<1x32xf32, #tpu.memory_space<vmem>>, %arg7: memref<16x32xbf16, #tpu.memory_space<vmem>>) attributes {dimension_semantics = [#tpu.dimension_semantics<parallel>], iteration_bounds = array<i64: 1>, scalar_prefetch = 0 : i64, scratch_operands = 0 : i64, tpu.core_type = #tpu.core_type<tc>, window_params = [{transform_indices = @transform_0, window_bounds = array<i64: 16, 64>}, {pipeline_mode = #tpu.pipeline_mode<synchronous>, transform_indices = @transform_1, window_bounds = array<i64: 64, 32>}, {pipeline_mode = #tpu.pipeline_mode<synchronous>, transform_indices = @transform_2, window_bounds = array<i64: 1, 32>}, {transform_indices = @transform_3, window_bounds = array<i64: 16, 32>}, {pipeline_mode = #tpu.pipeline_mode<synchronous>, transform_indices = @transform_4, window_bounds = array<i64: 1, 32>}, {pipeline_mode = #tpu.pipeline_mode<synchronous>, transform_indices = @transform_5, window_bounds = array<i64: 1, 32>}, {transform_indices = @transform_6, window_bounds = array<i64: 16, 32>}]} {
    %c0 = arith.constant 0 : index
    %c0_0 = arith.constant 0 : index
    %0 = vector.load %arg1[%c0, %c0_0] : memref<16x64xbf16, #tpu.memory_space<vmem>>, vector<16x64xbf16>
    %c0_1 = arith.constant 0 : index
    %c0_2 = arith.constant 0 : index
    %1 = vector.load %arg2[%c0_1, %c0_2] : memref<64x32xbf16, #tpu.memory_space<vmem>>, vector<64x32xbf16>
    %cst = arith.constant dense<0.000000e+00> : vector<16x32xf32>
    %2 = tpu.matmul %0, %1, %cst {dimension_numbers = #tpu.dot_dimension_numbers<[1], [0], [0], [1], [0, 0, 1, 1], [], []>} : vector<16x64xbf16>, vector<64x32xbf16>, vector<16x32xf32> -> vector<16x32xf32>
    %c0_3 = arith.constant 0 : index
    %c0_4 = arith.constant 0 : index
    %3 = vector.load %arg3[%c0_3, %c0_4] : memref<1x32xf32, #tpu.memory_space<vmem>>, vector<1x32xf32>
    %4 = vector.broadcast %3 : vector<1x32xf32> to vector<16x32xf32>
    %5 = arith.addf %2, %4 : vector<16x32xf32>
    %c0_5 = arith.constant 0 : index
    %c0_6 = arith.constant 0 : index
    %6 = vector.load %arg4[%c0_5, %c0_6] : memref<16x32xbf16, #tpu.memory_space<vmem>>, vector<16x32xbf16>
    %7 = arith.extf %6 : vector<16x32xbf16> to vector<16x32xf32>
    %8 = arith.addf %5, %7 : vector<16x32xf32>
    %cst_7 = arith.constant dense<0.000000e+00> : vector<16xf32>
    %9 = vector.multi_reduction <add>, %8, %cst_7 [1] : vector<16x32xf32> to vector<16xf32>
    %10 = vector.shape_cast %9 : vector<16xf32> to vector<16x1xf32>
    %cst_8 = arith.constant 3.200000e+01 : f32
    %11 = vector.broadcast %cst_8 : f32 to vector<16x1xf32>
    %12 = arith.divf %10, %11 : vector<16x1xf32>
    %13 = vector.broadcast %12 : vector<16x1xf32> to vector<16x32xf32>
    %14 = arith.subf %8, %13 : vector<16x32xf32>
    %15 = vector.broadcast %12 : vector<16x1xf32> to vector<16x32xf32>
    %16 = arith.subf %8, %15 : vector<16x32xf32>
    %17 = arith.mulf %14, %16 : vector<16x32xf32>
    %cst_9 = arith.constant dense<0.000000e+00> : vector<16xf32>
    %18 = vector.multi_reduction <add>, %17, %cst_9 [1] : vector<16x32xf32> to vector<16xf32>
    %19 = vector.shape_cast %18 : vector<16xf32> to vector<16x1xf32>
    %cst_10 = arith.constant 3.200000e+01 : f32
    %20 = vector.broadcast %cst_10 : f32 to vector<16x1xf32>
    %21 = arith.divf %19, %20 : vector<16x1xf32>
    %22 = vector.broadcast %12 : vector<16x1xf32> to vector<16x32xf32>
    %23 = arith.subf %8, %22 : vector<16x32xf32>
    %cst_11 = arith.constant 9.99999996E-13 : f32
    %24 = vector.broadcast %cst_11 : f32 to vector<16x1xf32>
    %25 = arith.addf %21, %24 : vector<16x1xf32>
    %26 = math.rsqrt %25 : vector<16x1xf32>
    %27 = vector.broadcast %26 : vector<16x1xf32> to vector<16x32xf32>
    %28 = arith.mulf %23, %27 : vector<16x32xf32>
    %c0_12 = arith.constant 0 : index
    %c0_13 = arith.constant 0 : index
    %29 = vector.load %arg5[%c0_12, %c0_13] : memref<1x32xf32, #tpu.memory_space<vmem>>, vector<1x32xf32>
    %30 = vector.broadcast %29 : vector<1x32xf32> to vector<16x32xf32>
    %31 = arith.mulf %28, %30 : vector<16x32xf32>
    %c0_14 = arith.constant 0 : index
    %c0_15 = arith.constant 0 : index
    %32 = vector.load %arg6[%c0_14, %c0_15] : memref<1x32xf32, #tpu.memory_space<vmem>>, vector<1x32xf32>
    %33 = vector.broadcast %32 : vector<1x32xf32> to vector<16x32xf32>
    %34 = arith.addf %31, %33 : vector<16x32xf32>
    %35 = arith.truncf %34 : vector<16x32xf32> to vector<16x32xbf16>
    %c0_16 = arith.constant 0 : index
    %c0_17 = arith.constant 0 : index
    %36 = vector.load %arg7[%c0_16, %c0_17] : memref<16x32xbf16, #tpu.memory_space<vmem>>, vector<16x32xbf16>
    tpu.vector_store %arg7[%c0_16, %c0_17], %35 {strides = array<i32>} : memref<16x32xbf16, #tpu.memory_space<vmem>>, vector<16x32xbf16>,
    return
  }
  func.func @transform_0(%arg0: i32) -> (i32, i32) {
    %c0_i32 = arith.constant 0 : i32
    %c0_i32_0 = arith.constant 0 : i32
    return %arg0, %c0_i32 : i32, i32
  }
  func.func @transform_1(%arg0: i32) -> (i32, i32) {
    %c0_i32 = arith.constant 0 : i32
    %c0_i32_0 = arith.constant 0 : i32
    %c0_i32_1 = arith.constant 0 : i32
    return %c0_i32, %c0_i32_0 : i32, i32
  }
  func.func @transform_2(%arg0: i32) -> (i32, i32) {
    %c0_i32 = arith.constant 0 : i32
    %c0_i32_0 = arith.constant 0 : i32
    %c0_i32_1 = arith.constant 0 : i32
    return %c0_i32, %c0_i32_0 : i32, i32
  }
  func.func @transform_3(%arg0: i32) -> (i32, i32) {
    %c0_i32 = arith.constant 0 : i32
    %c0_i32_0 = arith.constant 0 : i32
    return %arg0, %c0_i32 : i32, i32
  }
  func.func @transform_4(%arg0: i32) -> (i32, i32) {
    %c0_i32 = arith.constant 0 : i32
    %c0_i32_0 = arith.constant 0 : i32
    %c0_i32_1 = arith.constant 0 : i32
    return %c0_i32, %c0_i32_0 : i32, i32
  }
  func.func @transform_5(%arg0: i32) -> (i32, i32) {
    %c0_i32 = arith.constant 0 : i32
    %c0_i32_0 = arith.constant 0 : i32
    %c0_i32_1 = arith.constant 0 : i32
    return %c0_i32, %c0_i32_0 : i32, i32
  }
  func.func @transform_6(%arg0: i32) -> (i32, i32) {
    %c0_i32 = arith.constant 0 : i32
    %c0_i32_0 = arith.constant 0 : i32
    return %arg0, %c0_i32 : i32, i32
  }
}

module attributes {stable_mosaic.version = 11 : i64} {
  func.func @_linear_kernel(%arg0: i32, %arg1: memref<2x32xbf16, #tpu.memory_space<vmem>>, %arg2: memref<32x2xbf16, #tpu.memory_space<vmem>>, %arg3: memref<1x2xf32, #tpu.memory_space<vmem>>, %arg4: memref<2x2xf32, #tpu.memory_space<vmem>>) attributes {dimension_semantics = [#tpu.dimension_semantics<parallel>], iteration_bounds = array<i64: 1>, scalar_prefetch = 0 : i64, scratch_operands = 0 : i64, tpu.core_type = #tpu.core_type<tc>, window_params = [{transform_indices = @transform_0, window_bounds = array<i64: 2, 32>}, {pipeline_mode = #tpu.pipeline_mode<synchronous>, transform_indices = @transform_1, window_bounds = array<i64: 32, 2>}, {pipeline_mode = #tpu.pipeline_mode<synchronous>, transform_indices = @transform_2, window_bounds = array<i64: 1, 2>}, {transform_indices = @transform_3, window_bounds = array<i64: 2, 2>}]} {
    %c0 = arith.constant 0 : index
    %c0_0 = arith.constant 0 : index
    %0 = vector.load %arg1[%c0, %c0_0] : memref<2x32xbf16, #tpu.memory_space<vmem>>, vector<2x32xbf16>
    %c0_1 = arith.constant 0 : index
    %c0_2 = arith.constant 0 : index
    %1 = vector.load %arg2[%c0_1, %c0_2] : memref<32x2xbf16, #tpu.memory_space<vmem>>, vector<32x2xbf16>
    %cst = arith.constant dense<0.000000e+00> : vector<2x2xf32>
    %2 = tpu.matmul %0, %1, %cst {dimension_numbers = #tpu.dot_dimension_numbers<[1], [0], [0], [1], [0, 0, 1, 1], [], []>} : vector<2x32xbf16>, vector<32x2xbf16>, vector<2x2xf32> -> vector<2x2xf32>
    %c0_3 = arith.constant 0 : index
    %c0_4 = arith.constant 0 : index
    %3 = vector.load %arg3[%c0_3, %c0_4] : memref<1x2xf32, #tpu.memory_space<vmem>>, vector<1x2xf32>
    %4 = vector.broadcast %3 : vector<1x2xf32> to vector<2x2xf32>
    %5 = arith.addf %2, %4 : vector<2x2xf32>
    %c0_5 = arith.constant 0 : index
    %c0_6 = arith.constant 0 : index
    %6 = vector.load %arg4[%c0_5, %c0_6] : memref<2x2xf32, #tpu.memory_space<vmem>>, vector<2x2xf32>
    tpu.vector_store %arg4[%c0_5, %c0_6], %5 {strides = array<i32>} : memref<2x2xf32, #tpu.memory_space<vmem>>, vector<2x2xf32>,
    return
  }
  func.func @transform_0(%arg0: i32) -> (i32, i32) {
    %c0_i32 = arith.constant 0 : i32
    %c0_i32_0 = arith.constant 0 : i32
    return %arg0, %c0_i32 : i32, i32
  }
  func.func @transform_1(%arg0: i32) -> (i32, i32) {
    %c0_i32 = arith.constant 0 : i32
    %c0_i32_0 = arith.constant 0 : i32
    %c0_i32_1 = arith.constant 0 : i32
    return %c0_i32, %c0_i32_0 : i32, i32
  }
  func.func @transform_2(%arg0: i32) -> (i32, i32) {
    %c0_i32 = arith.constant 0 : i32
    %c0_i32_0 = arith.constant 0 : i32
    %c0_i32_1 = arith.constant 0 : i32
    return %c0_i32, %c0_i32_0 : i32, i32
  }
  func.func @transform_3(%arg0: i32) -> (i32, i32) {
    %c0_i32 = arith.constant 0 : i32
    %c0_i32_0 = arith.constant 0 : i32
    return %arg0, %c0_i32 : i32, i32
  }
}

</mosaic_0001>

<bundles_post_ra>
// kernel: bert_classifier_forward.12
= control target key start
LH: loop header
LB: loop body
LE: loop exit
PB: predicated region body
PF: predicated region fallthrough
CT: control target
= control target key end

     0   :  { %vm18_vm0 = vcmask 261120   ;;  %vm72_vm1 = vcmask 257024   ;;  %s132_s0 = inlined_call_operand.vmem [shape: bf16[16,32], index: 0, kind: input, shape index: {}]   ;;  %s133_s1 = inlined_call_operand.vmem [shape: f32[1,32], index: 1, kind: input, shape index: {}]   ;;  %s134_s2 = inlined_call_operand.vmem [shape: f32[1,32], index: 2, kind: input, shape index: {}]   ;;  %s135_s3 = inlined_call_operand.vmem [shape: bf16[16,32], index: 3, kind: output, shape index: {}]  }
   0x1   :  { %v86_v0 = vld [vmem:[%s132_s0] sm:$0xff]  }
   0x2   :  { %v87_v1 = vunpack.c.l.bf16 %v86_v0  ;;  %v88_v2 = vunpack.c.h.bf16 %v86_v0  ;;  %v79_v22 = vld [vmem:[%s133_s1] ss:$0 sm:$0xff] }
   0x3   :  { %v80_v24 = vld [vmem:[%s134_s2] ss:$0 sm:$0xff] }
   0x4   :  { %v19_v3 = vsel %vm18_vm0, %v87_v1, 0.0  ;;  %v22_v4 = vsel %vm18_vm0, %v88_v2, 0.0 }
   0x5   :  { %20 = vadd.xlane.f32.xlu0 %v19_v3 }
   0x9   :  { %23 = vadd.xlane.f32.xlu0 %v22_v4 }
  0x92   :  { %v21_v5 = vpop.xlane.xlu0 %20 }
  0x93   :  { %v26_v6 = vmul.f32 0.03125, %v21_v5 }
  0x95   :  { %v28_v7 = vsub.f32 %v87_v1, %v26_v6 }
  0x96   :  { %v24_v8 = vpop.xlane.xlu0 %23 }
  0x97   :  { %v27_v9 = vmul.f32 0.03125, %v24_v8  ;;  %v30_v10 = vmul.f32 %v28_v7, %v28_v7 }
  0x99   :  { %v29_v11 = vsub.f32 %v88_v2, %v27_v9  ;;  %v32_v12 = vsel %vm18_vm0, %v30_v10, 0.0 }
  0x9a   :  { %33 = vadd.xlane.f32.xlu1 %v32_v12 }
  0x9b   :  { %v31_v13 = vmul.f32 %v29_v11, %v29_v11 }
  0x9d   :  { %v35_v14 = vsel %vm18_vm0, %v31_v13, 0.0 }
  0x9e   :  { %36 = vadd.xlane.f32.xlu1 %v35_v14 }
 0x127   :  { %v34_v15 = vpop.xlane.xlu1 %33 }
 0x128   :  { %v38_v16 = vmul.f32 0.03125, %v34_v15 }
 0x12a   :  { %v40_v17 = vadd.f32 1e-12, %v38_v16 }
 0x12b   :  { %v37_v18 = vpop.xlane.xlu1 %36 }
 0x12c   :  { %89 = vrsqrt.f32 %v40_v17  ;;  %v39_v19 = vmul.f32 0.03125, %v37_v18 }
 0x12e   :  { %v41_v20 = vadd.f32 1e-12, %v39_v19 }
 0x130   :  { %91 = vrsqrt.f32 %v41_v20 }
 0x136   :  { %v90_v21 = vpop.eup %89 }
 0x137   :  { %v44_v23 = vmul.f32 %v90_v21, %v28_v7 }
 0x139   :  { %v53_v25 = vmul.f32 %v79_v22, %v44_v23 }
 0x13a   :  { %v92_v26 = vpop.eup %91 }
 0x13b   :  { %v62_v27 = vadd.f32 %v80_v24, %v53_v25  ;;  %v45_v28 = vmul.f32 %v92_v26, %v29_v11 }
 0x13d   :  { %v83_v29 = vpack.c.bf16 %v62_v27, %v62_v27  ;;  %v54_v30 = vmul.f32 %v79_v22, %v45_v28 }
 0x13f   :  { %73 = vst.msk [vmem:[%s135_s3] sm:$0xf] %vm72_vm1, %v83_v29  ;;  %v63_v31 = vadd.f32 %v80_v24, %v54_v30 }
 0x141   :  { %v84_v32 = vpack.c.bf16 %v63_v31, %v63_v31 }
 0x143   :  { %74 = vst.msk [vmem:[%s135_s3 + $0x4] sm:$0xf] %vm72_vm1, %v84_v32 }

// kernel: bert_classifier_forward.13
= control target key start
LH: loop header
LB: loop body
LE: loop exit
PB: predicated region body
PF: predicated region fallthrough
CT: control target
= control target key end

     0   :  { %s531_s12 = smov 0   ;;  %s533_s13 = smov 0   ;;  %s570_s0 = inlined_call_operand.vmem [shape: bf16[16,32], index: 0, kind: input, shape index: {}]   ;;  %s571_s1 = inlined_call_operand.vmem [shape: bf16[3,32,32], index: 1, kind: input, shape index: {}]   ;;  %s572_s2 = inlined_call_operand.vmem [shape: f32[3,1,32], index: 2, kind: input, shape index: {}]   ;;  %s573_s3 = inlined_call_operand.vmem [shape: bf16[3,16,32], index: 3, kind: output, shape index: {}]  }
   0x1   :  { %s535_s14 = smov 0  }
   0x2 LB: > { %s25_s15 = sadd.s32 1, %s503_s13  ;;  %p427_p0 = scmp.ge.s32.totalorder %s507_s14, 1  ;;  %s507_s14 = sphi %s535_s14, %s13_s14   ;;  %s503_s13 = sphi %s533_s13, %s575_s13   ;;  %s499_s12 = sphi %s531_s12, %s574_s12  }
   0x3   : > { %p27_p1 = scmp.ge.s32.totalorder %s25_s15, 3  ;;  %p170_p2 = scmp.lt.s32.totalorder %s507_s14, 4 }
   0x5   : > { %s577_s15 = smov (%p27_p1, %s25_s15), 0  ;;  %p171_p3 = pnand %p427_p0, %p170_p2 }
   0x6   : > { %p212_p4 = scmp.lt.s32.totalorder (!%p171_p3), %s499_s12, 2  ;;  %v509_v0 = vmov (!%p171_p3), 0.0   ;;  %vm510_vm0 = vmmov (!%p171_p3), 0   ;;  %v484_v3 = vld [vmem:[%s570_s0] sm:$0xff] (!%p171_p3)   ;;  %vm261_vm1 = vcmask (!%p171_p3), 261120   ;;  %vm314_vm2 = vcmask (!%p171_p3), 257024  }
   0x7   : > { %174 = sbr.rel (%p171_p3) target bundleno = 244 (0xf4), region = 32  ;;  %448 = vmatprep.subr.bf16.mxu0 (!%p171_p3), %v509_v0  ;;  %452 = vmatprep.mubr.msk.bf16.mxu0 (!%p171_p3), %vm510_vm0, %v509_v0 }
   0xe   : > { %s579_s12 = smov (!%p212_p4, %s499_s12), 2 }
   0xf   : > { %s441_s16 = sshll.u32 %s579_s12, 4  ;;  %s219_s24 = scalar_lea.vmem %s572_s2, %s579_s12 }
  0x10   : > { %s216_s19 = scalar_lea.vmem %s571_s1, %s441_s16  ;;  %v432_v4 = vld [vmem:[%s219_s24] ss:$0 sm:$0xff]  ;;  %s442_s25 = sshll.u32 %s579_s12, 3 }
  0x11   : > { %v482_v1 = vld [vmem:[%s216_s19] sm:$0xff]   ;;  %v483_v2 = vld [vmem:[%s216_s19 + $0x8] sm:$0xff]   ;;  %s228_s28 = scalar_lea.vmem %s573_s3, %s442_s25 }
  0x12   : > { %449 = vmatpush3.bf16.msra.mxu0 %v482_v1 }
  0x13   : > { %450 = vmatprep.subr.bf16.mxu0 %v509_v0 }
  0x16   : > { %451 = vmatpush3.bf16.msra.mxu0 %v483_v2 }
  0x19   : > { %453 = vmatmul.mubr.msk.bf16.vlgmr.msra.gmra.mrb[0].mxu0 %vm261_vm1, %v484_v3 }
  0xec   : > { %v299_v5 = vpop.f32.mrb[0].mxu0 }
  0xed   : > { %v300_v6 = vadd.f32 %v432_v4, %v299_v5  ;;  %v454_v7 = vpop.f32.mrb[1].mxu0 }
  0xee   : > { %v302_v8 = vpop.f32.mrb[2].mxu0 }
  0xef   : > { %v443_v9 = vpack.c.bf16 %v300_v6, %v300_v6  ;;  %v303_v10 = vadd.f32 %v432_v4, %v302_v8  ;;  %v455_v11 = vpop.f32.mrb[3].mxu0 }
  0xf1   : > { %315 = vst.msk [vmem:[%s228_s28] sm:$0xf] %vm314_vm2, %v443_v9  ;;  %v444_v12 = vpack.c.bf16 %v303_v10, %v303_v10 }
  0xf3   : > { %316 = vst.msk [vmem:[%s228_s28 + $0x4] sm:$0xf] %vm314_vm2, %v444_v12 }
  0xf4 PF: > { %s13_s14 = sadd.s32 1, %s507_s14   ;;  %s574_s12 = smov %s503_s13 }
  0xf5   : > { %p10_p5 = scmp.ge.s32.totalorder %s13_s14, 5   ;;  %s575_s13 = smov %s577_s15 }
  0xf7   :  { %12 = sbr.rel (!%p10_p5) target bundleno = 2 (0x2), region = 68 }

// kernel: bert_classifier_forward.15
= control target key start
LH: loop header
LB: loop body
LE: loop exit
PB: predicated region body
PF: predicated region fallthrough
CT: control target
= control target key end

     0   :  { %v200_v0 = vmov 0.0   ;;  %vm201_vm0 = vmmov 0   ;;  %vm54_vm1 = vcmask 261120   ;;  %vm158_vm2 = vcmask 257024   ;;  %s269_s1 = inlined_call_operand.vmem [shape: bf16[32,32], index: 1, kind: input, shape index: {}]   ;;  %s270_s0 = inlined_call_operand.vmem [shape: bf16[16,32], index: 0, kind: input, shape index: {}]   ;;  %s271_s3 = inlined_call_operand.vmem [shape: bf16[16,32], index: 3, kind: input, shape index: {}]   ;;  %s272_s2 = inlined_call_operand.vmem [shape: f32[1,32], index: 2, kind: input, shape index: {}]   ;;  %s273_s4 = inlined_call_operand.vmem [shape: f32[1,32], index: 4, kind: input, shape index: {}]   ;;  %s274_s5 = inlined_call_operand.vmem [shape: f32[1,32], index: 5, kind: input, shape index: {}]   ;;  %s275_s6 = inlined_call_operand.vmem [shape: bf16[16,32], index: 6, kind: output, shape index: {}]  }
   0x1   :  { %183 = vmatprep.subr.bf16.mxu0 %v200_v0  ;;  %v193_v1 = vld [vmem:[%s269_s1] sm:$0xff]   ;;  %187 = vmatprep.mubr.msk.bf16.mxu0 %vm201_vm0, %v200_v0  ;;  %v194_v2 = vld [vmem:[%s269_s1 + $0x8] sm:$0xff]  }
   0x2   :  { %184 = vmatpush3.bf16.msra.mxu0 %v193_v1  ;;  %v195_v3 = vld [vmem:[%s270_s0] sm:$0xff]  }
   0x3   :  { %185 = vmatprep.subr.bf16.mxu0 %v200_v0  ;;  %v177_v4 = vld [vmem:[%s271_s3] sm:$0xff]  }
   0x4   :  { %v165_v5 = vld [vmem:[%s272_s2] ss:$0 sm:$0xff]  ;;  %v178_v6 = vunpack.c.l.bf16 %v177_v4  ;;  %v179_v10 = vunpack.c.h.bf16 %v177_v4 }
   0x5   :  { %v170_v35 = vld [vmem:[%s273_s4] ss:$0 sm:$0xff] }
   0x6   :  { %186 = vmatpush3.bf16.msra.mxu0 %v194_v2  ;;  %v171_v37 = vld [vmem:[%s274_s5] ss:$0 sm:$0xff] }
   0x9   :  { %188 = vmatmul.mubr.msk.bf16.vlgmr.msra.gmra.mrb[0].mxu0 %vm54_vm1, %v195_v3 }
  0xdc   :  { %v92_v7 = vpop.f32.mrb[0].mxu0 }
  0xdd   :  { %v93_v8 = vadd.f32 %v165_v5, %v92_v7  ;;  %v189_v9 = vpop.f32.mrb[1].mxu0 }
  0xde   :  { %v95_v11 = vpop.f32.mrb[2].mxu0 }
  0xdf   :  { %v96_v12 = vadd.f32 %v165_v5, %v95_v11  ;;  %v190_v13 = vpop.f32.mrb[3].mxu0  ;;  %v103_v14 = vadd.f32 %v178_v6, %v93_v8 }
  0xe1   :  { %v105_v15 = vsel %vm54_vm1, %v103_v14, 0.0  ;;  %v104_v16 = vadd.f32 %v179_v10, %v96_v12 }
  0xe2   :  { %106 = vadd.xlane.f32.xlu0 %v105_v15 }
  0xe3   :  { %v108_v17 = vsel %vm54_vm1, %v104_v16, 0.0 }
  0xe6   :  { %109 = vadd.xlane.f32.xlu0 %v108_v17 }
 0x16f   :  { %v107_v18 = vpop.xlane.xlu0 %106 }
 0x170   :  { %v112_v19 = vmul.f32 0.03125, %v107_v18 }
 0x172   :  { %v114_v20 = vsub.f32 %v103_v14, %v112_v19 }
 0x173   :  { %v110_v21 = vpop.xlane.xlu0 %109 }
 0x174   :  { %v113_v22 = vmul.f32 0.03125, %v110_v21  ;;  %v116_v23 = vmul.f32 %v114_v20, %v114_v20 }
 0x176   :  { %v115_v24 = vsub.f32 %v104_v16, %v113_v22  ;;  %v118_v25 = vsel %vm54_vm1, %v116_v23, 0.0 }
 0x177   :  { %119 = vadd.xlane.f32.xlu1 %v118_v25 }
 0x178   :  { %v117_v26 = vmul.f32 %v115_v24, %v115_v24 }
 0x17a   :  { %v121_v27 = vsel %vm54_vm1, %v117_v26, 0.0 }
 0x17b   :  { %122 = vadd.xlane.f32.xlu1 %v121_v27 }
 0x204   :  { %v120_v28 = vpop.xlane.xlu1 %119 }
 0x205   :  { %v124_v29 = vmul.f32 0.03125, %v120_v28 }
 0x207   :  { %v126_v30 = vadd.f32 1e-12, %v124_v29 }
 0x208   :  { %v123_v31 = vpop.xlane.xlu1 %122 }
 0x209   :  { %196 = vrsqrt.f32 %v126_v30  ;;  %v125_v32 = vmul.f32 0.03125, %v123_v31 }
 0x20b   :  { %v127_v33 = vadd.f32 1e-12, %v125_v32 }
 0x20d   :  { %198 = vrsqrt.f32 %v127_v33 }
 0x213   :  { %v197_v34 = vpop.eup %196 }
 0x214   :  { %v130_v36 = vmul.f32 %v197_v34, %v114_v20 }
 0x216   :  { %v139_v38 = vmul.f32 %v170_v35, %v130_v36 }
 0x217   :  { %v199_v39 = vpop.eup %198 }
 0x218   :  { %v148_v40 = vadd.f32 %v171_v37, %v139_v38  ;;  %v131_v41 = vmul.f32 %v199_v39, %v115_v24 }
 0x21a   :  { %v174_v42 = vpack.c.bf16 %v148_v40, %v148_v40  ;;  %v140_v43 = vmul.f32 %v170_v35, %v131_v41 }
 0x21c   :  { %159 = vst.msk [vmem:[%s275_s6] sm:$0xf] %vm158_vm2, %v174_v42  ;;  %v149_v44 = vadd.f32 %v171_v37, %v140_v43 }
 0x21e   :  { %v175_v45 = vpack.c.bf16 %v149_v44, %v149_v44 }
 0x220   :  { %160 = vst.msk [vmem:[%s275_s6 + $0x4] sm:$0xf] %vm158_vm2, %v175_v45 }

// kernel: bert_classifier_forward.14
= control target key start
LH: loop header
LB: loop body
LE: loop exit
PB: predicated region body
PF: predicated region fallthrough
CT: control target
= control target key end

     0   :  { %s935_s15 = smov 0   ;;  %s937_s16 = smov 0   ;;  %s1028_s0 = inlined_call_operand.vmem [shape: bf16[3,2,8,32], index: 0, kind: input, shape index: {}, may-alias: {0,1,2}]   ;;  %s1029_s1 = inlined_call_operand.vmem [shape: bf16[3,2,8,32], index: 1, kind: input, shape index: {}, may-alias: {0,1,2}]   ;;  %s1030_s2 = inlined_call_operand.vmem [shape: bf16[3,2,8,32], index: 2, kind: input, shape index: {}, may-alias: {0,1,2}]   ;;  %s1031_s3 = inlined_call_operand.vmem [shape: f32[2,1,8], index: 3, kind: input, shape index: {}]   ;;  %s1032_s4 = inlined_call_operand.vmem [shape: bf16[2,8,32], index: 4, kind: output, shape index: {}]  }
   0x1   :  { %s939_s17 = smov 0  }
   0x2 LB: > { %s33_s18 = sadd.s32 1, %s898_s16  ;;  %p782_p0 = scmp.ge.s32.totalorder %s902_s17, 1  ;;  %s902_s17 = sphi %s939_s17, %s14_s17   ;;  %s898_s16 = sphi %s937_s16, %s1034_s16   ;;  %s894_s15 = sphi %s935_s15, %s1033_s15  }
   0x3   : > { %p35_p1 = scmp.ge.s32.totalorder %s33_s18, 2  ;;  %p230_p2 = scmp.lt.s32.totalorder %s902_s17, 3 }
   0x5   : > { %s1036_s18 = smov (%p35_p1, %s33_s18), 0  ;;  %p231_p3 = pnand %p782_p0, %p230_p2 }
   0x6   : > { %p282_p4 = scmp.lt.s32.totalorder (!%p231_p3), %s894_s15, 1  ;;  %vm328_vm0 = vcmask (!%p231_p3), 130048   ;;  %v904_v0 = vmov (!%p231_p3), 0.0   ;;  %vm905_vm1 = vmmov (!%p231_p3), 0   ;;  %vm323_vm2 = vcmask (!%p231_p3), 7168   ;;  %s908_s29 = smov (!%p231_p3), 112  }
   0x7   : > { %234 = sbr.rel (%p231_p3) target bundleno = 1459 (0x5b3), region = 36  ;;  %809 = vmatprep.subr.bf16.mxu0 (!%p231_p3), %v904_v0  ;;  %329 = vst.msk [vmem:[#allocation4] sm:$0xff] (!%p231_p3), %vm328_vm0, %v904_v0  ;;  %330 = vst.msk [vmem:[#allocation4 + $0x8] sm:$0xff] (!%p231_p3), %vm328_vm0, %v904_v0  ;;  %811 = vmatprep.mubr.msk.bf16.mxu0 (!%p231_p3), %vm905_vm1, %v904_v0  ;;  %v906_v4 = vmov (!%p231_p3), -inf   ;;  %vm391_vm3 = vcmask (!%p231_p3), 64512   ;;  %v907_v13 = vmov (!%p231_p3), 0  }
   0x8   : > { %815 = vmatprep.subr.bf16.mxu1 (!%p231_p3), %v904_v0  ;;  %817 = vmatprep.mubr.msk.bf16.mxu1 (!%p231_p3), %vm905_vm1, %v904_v0  ;;  %324 = vst.msk [vmem:[#allocation2] sm:$0xff] (!%p231_p3), %vm323_vm2, %v906_v4  ;;  %325 = vst.msk [vmem:[#allocation2 + $0x8] sm:$0xff] (!%p231_p3), %vm323_vm2, %v906_v4  ;;  %vm426_vm4 = vcmask (!%p231_p3), 1043456   ;;  %s909_s7 = smov (!%p231_p3), 16   ;;  %vm651_vm5 = vcmask (!%p231_p3), 257024  }
   0x9   : > { %326 = vst.msk [vmem:[#allocation3] sm:$0xff] (!%p231_p3), %vm323_vm2, %v904_v0  ;;  %327 = vst.msk [vmem:[#allocation3 + $0x8] sm:$0xff] (!%p231_p3), %vm323_vm2, %v904_v0  ;;  %863 = vset.pattern.permute.xlu0 (!%p231_p3), %v907_v13  ;;  %864 = vset.pattern.permute.xlu1 (!%p231_p3), %v907_v13 }
   0xe   : > { %s1038_s15 = smov (!%p282_p4, %s894_s15), 1 }
   0xf   : > { %s963_s19 = sshll.u32 %s1038_s15, 2  ;;  %s310_s28 = scalar_lea.vmem %s1031_s3, %s1038_s15  ;;  %v390_v16 = vld [vmem:[#allocation2] sm:$0xff]  ;;  %v535_v42 = vld [vmem:[#allocation2 + $0x8] sm:$0xff] }
  0x10   : > { %s712_s22 = scalar_lea.vmem %s1029_s1, %s963_s19  ;;  %s973_s25 = scalar_lea.vmem %s1028_s0, %s963_s19  ;;  %v790_v6 = vld [vmem:[%s310_s28] ss:$0 sm:$0xff]  ;;  %v407_v59 = vld [vmem:[#allocation3] sm:$0xff] }
  0x11   : > { %v787_v1 = vld [vmem:[%s712_s22 + $0x8] sm:$0xf]  ;;  %v332_v3 = vld [vmem:[%s973_s25] sm:$0xf]  ;;  %s716_s6 = scalar_lea.vmem %s1030_s2, %s963_s19  ;;  %s317_s10 = scalar_lea.vmem %s1032_s4, %s963_s19 }
  0x12   : > { %v340_v2 = vsel %vm328_vm0, %v787_v1, 0  ;;  %v865_v14 = vld [vmem:[%s712_s22 + $0x8] ss:$0 sps:$4 sm:$0xff]   ;;  %v866_v15 = vld [vmem:[%s973_s25] ss:$0 sps:$4 sm:$0xff]  }
  0x13   : > { %810 = vmatpush3.bf16.xpose.msra.mxu0 %v340_v2  ;;  %484 = vrot.lane.b32.xlu1 %v865_v14, %s908_s29  ;;  %v788_v20 = vld [vmem:[%s716_s6 + $0x10] sm:$0xf]  ;;  %v552_v2 = vld [vmem:[#allocation3 + $0x8] sm:$0xff]  ;;  %v560_v14 = vld [vmem:[#allocation4 + $0x8] sm:$0xff] }
  0x14   : > { %827 = vmatprep.subr.bf16.mxu0 %v904_v0  ;;  %v867_v21 = vld [vmem:[%s716_s6 + $0x10] ss:$0 sps:$4 sm:$0xff]   ;;  %v428_v22 = vsel %vm426_vm4, %v788_v20, 0 }
  0x15   : > { %816 = vmatpush3.bf16.msra.mxu1 %v428_v22 }
  0x16   : > { %821 = vmatprep.subr.bf16.mxu1 %v904_v0 }
  0x17   : > { %479 = vrot.lane.b32.xlu1 %v866_v15, %s908_s29 }
  0x1a   : > { %812 = vmatmul.mubr.msk.bf16.vlgmr.msra.gmra.mrb[0].mxu0 %vm328_vm0, %v332_v3 }
  0x1b   : > { %829 = vmatprep.mubr.msk.bf16.mxu0 %vm905_vm1, %v904_v0 }
  0x85   : > { %v485_v26 = vpop.permute.xlu1 %484 }
  0x86   : > { %v490_v28 = vsel %vm328_vm0, %v485_v26, 0 }
  0x89   : > { %v480_v30 = vpop.permute.xlu1 %479 }
  0xed   : > { %v376_v5 = vpop.f32.mrb[0].mxu0 }
  0xee   : > { %v382_v7 = vmul.f32 0.25, %v376_v5  ;;  %v813_v8 = vpop.f32.mrb[1].mxu0 }
  0xef   : > { %v379_v9 = vpop.f32.mrb[2].mxu0 }
  0xf0   : > { %v814_v10 = vpop.f32.mrb[3].mxu0  ;;  %v389_v11 = vadd.f32 %v790_v6, %v382_v7  ;;  %v415_v7 = vld [vmem:[#allocation4] sm:$0xff] }
  0xf2   : > { %v392_v12 = vsel %vm391_vm3, %v389_v11, -inf }
  0xf3   : > { %393 = vmax.xlane.f32.xlu0 %v392_v12 }
 0x180   : > { %v394_v17 = vpop.xlane.xlu0 %393 }
 0x181   : > { %v395_v18 = vmax.f32 %v390_v16, %v394_v17 }
 0x183   : > { %v396_v19 = vsub.f32 %v390_v16, %v395_v18  ;;  %472 = vst.msk [vmem:[#allocation2] sm:$0xff] %vm323_vm2, %v395_v18  ;;  %401 = vperm.xlu0 %863, %v395_v18  }
 0x185   : > { %v397_v56 = vmul.f32 1.442695, %v396_v19 }
 0x187   : > { %571 = vrot.lane.b32.xlu0 %v867_v21, %s908_s29 }
 0x202   : > { %v402_v23 = vpop.permute.xlu0 %401 }
 0x203   : > { %v404_v24 = vsub.f32 %v389_v11, %v402_v23 }
 0x205   : > { %v405_v25 = vmul.f32 1.442695, %v404_v24 }
 0x206   : > { %v572_v46 = vpop.permute.xlu0 %571 }
 0x207   : > { %868 = vpow2.f32 %v405_v25  ;;  %v577_v47 = vsel %vm426_vm4, %v572_v46, 0 }
 0x208   : > { %828 = vmatpush3.bf16.msra.mxu0 %v577_v47 }
 0x211   : > { %v869_v27 = vpop.eup %868 }
 0x212   : > { %v422_v29 = vpack.c.bf16 %v869_v27, %v869_v27  ;;  %v409_v48 = vsel %vm391_vm3, %v869_v27, 0.0 }
 0x214   : > { %818 = vmatmul.mubr.msk.bf16.vlgmr.msra.gmra.mrb[0].mxu1 %vm391_vm3, %v422_v29 }
 0x215   : > { %822 = vmatpush3.bf16.xpose.msra.mxu1 %v490_v28  ;;  %823 = vmatprep.mubr.msk.bf16.mxu1 %vm905_vm1, %v904_v0 }
 0x21c   : > { %824 = vmatmul.mubr.msk.bf16.vlgmr.msra.gmra.mrb[4].mxu1 %vm328_vm0, %v480_v30 }
 0x2e7   : > { %v464_v31 = vpop.f32.mrb[0].mxu1 }
 0x2e8   : > { %v819_v32 = vpop.f32.mrb[1].mxu1 }
 0x2e9   : > { %v467_v33 = vpop.f32.mrb[2].mxu1 }
 0x2ea   : > { %v820_v34 = vpop.f32.mrb[3].mxu1 }
 0x2ef   : > { %v526_v35 = vpop.f32.mrb[4].mxu1 }
 0x2f0   : > { %v532_v36 = vmul.f32 0.25, %v526_v35  ;;  %v825_v37 = vpop.f32.mrb[5].mxu1 }
 0x2f1   : > { %v529_v38 = vpop.f32.mrb[6].mxu1 }
 0x2f2   : > { %v826_v39 = vpop.f32.mrb[7].mxu1  ;;  %v533_v40 = vadd.f32 %v790_v6, %v532_v36 }
 0x2f4   : > { %v536_v41 = vsel %vm391_vm3, %v533_v40, -inf }
 0x2f5   : > { %537 = vmax.xlane.f32.xlu1 %v536_v41 }
 0x382   : > { %v538_v43 = vpop.xlane.xlu1 %537 }
 0x383   : > { %v539_v44 = vmax.f32 %v535_v42, %v538_v43 }
 0x385   : > { %v540_v45 = vsub.f32 %v535_v42, %v539_v44  ;;  %621 = vst.msk [vmem:[#allocation2 + $0x8] sm:$0xff] %vm323_vm2, %v539_v44  ;;  %545 = vperm.xlu1 %864, %v539_v44  }
 0x387   : > { %v541_v55 = vmul.f32 1.442695, %v540_v45 }
 0x3a9   : > { %410 = vadd.xlane.f32.xlu1 %v409_v48 }
 0x404   : > { %v546_v49 = vpop.permute.xlu1 %545 }
 0x405   : > { %v548_v50 = vsub.f32 %v533_v40, %v546_v49 }
 0x407   : > { %v549_v51 = vmul.f32 1.442695, %v548_v50 }
 0x409   : > { %870 = vpow2.f32 %v549_v51 }
 0x40a   : > { %872 = vpow2.f32 %v541_v55 }
 0x40b   : > { %874 = vpow2.f32 %v397_v56 }
 0x413   : > { %v871_v52 = vpop.eup %870 }
 0x414   : > { %v554_v53 = vsel %vm391_vm3, %v871_v52, 0.0  ;;  %v567_v54 = vpack.c.bf16 %v871_v52, %v871_v52  ;;  %v873_v57 = vpop.eup %872 }
 0x415   : > { %555 = vadd.xlane.f32.xlu0 %v554_v53  ;;  %v875_v58 = vpop.eup %874  ;;  %v553_v3 = vmul.f32 %v873_v57, %v552_v2 }
 0x416   : > { %830 = vmatmul.mubr.msk.bf16.vlgmr.msra.gmra.mrb[4].mxu0 %vm391_vm3, %v567_v54  ;;  %v408_v60 = vmul.f32 %v875_v58, %v407_v59 }
 0x42b   : > { %563 = vperm.xlu0 %863, %v873_v57  }
 0x42f   : > { %418 = vperm.xlu0 %863, %v875_v58  }
 0x436   : > { %v411_v61 = vpop.xlane.xlu1 %410 }
 0x437   : > { %v412_v62 = vadd.f32 %v411_v61, %v408_v60 }
 0x439   : > { %414 = vst.msk [vmem:[#allocation3] sm:$0xff] %vm323_vm2, %v412_v62 }
 0x440   : > { %v625_v63 = vld [vmem:[#allocation3] sm:$0xff] }
 0x441   : > { %v626_v0 = vmax.f32 %v625_v63, 1e-20 }
 0x443   : > { %876 = vrcp.f32 %v626_v0 }
 0x44d   : > { %v877_v1 = vpop.eup %876 }
 0x44e   : > { %631 = vperm.xlu0 %863, %v877_v1  }
 0x4a2   : > { %v556_v4 = vpop.xlane.xlu0 %555 }
 0x4a3   : > { %v557_v5 = vadd.f32 %v556_v4, %v553_v3 }
 0x4a5   : > { %558 = vst.msk [vmem:[#allocation3 + $0x8] sm:$0xff] %vm323_vm2, %v557_v5 }
 0x4aa   : > { %v564_v6 = vpop.permute.xlu0 %563 }
 0x4ab   : > { %v566_v15 = vmul.f32 %v564_v6, %v560_v14 }
 0x4ac   : > { %v635_v8 = vld [vmem:[#allocation3 + $0x8] sm:$0xff] }
 0x4ad   : > { %v636_v9 = vmax.f32 %v635_v8, 1e-20 }
 0x4ae   : > { %v419_v10 = vpop.permute.xlu0 %418 }
 0x4af   : > { %v421_v11 = vmul.f32 %v419_v10, %v415_v7  ;;  %878 = vrcp.f32 %v636_v9 }
 0x4b1   : > { %v470_v12 = vadd.f32 %v464_v31, %v421_v11 }
 0x4b3   : > { %471 = vst.msk [vmem:[#allocation4] sm:$0xff] %vm328_vm0, %v470_v12 }
 0x4b9   : > { %v879_v13 = vpop.eup %878 }
 0x4ba   : > { %641 = vperm.xlu1 %864, %v879_v13   ;;  %v628_v25 = vld [vmem:[#allocation4] sm:$0xff] }
 0x4cd   : > { %v632_v24 = vpop.permute.xlu0 %631 }
 0x4ce   : > { %v634_v26 = vmul.f32 %v632_v24, %v628_v25 }
 0x4e9   : > { %v613_v16 = vpop.f32.mrb[4].mxu0 }
 0x4ea   : > { %v619_v17 = vadd.f32 %v613_v16, %v566_v15  ;;  %v831_v18 = vpop.f32.mrb[5].mxu0 }
 0x4eb   : > { %v616_v19 = vpop.f32.mrb[6].mxu0 }
 0x4ec   : > { %620 = vst.msk [vmem:[#allocation4 + $0x8] sm:$0xff] %vm328_vm0, %v619_v17  ;;  %v832_v20 = vpop.f32.mrb[7].mxu0 }
 0x4f3   : > { %v638_v22 = vld [vmem:[#allocation4 + $0x8] sm:$0xff] }
 0x539   : > { %v642_v21 = vpop.permute.xlu1 %641 }
 0x53a   : > { %v644_v23 = vmul.f32 %v642_v21, %v638_v22 }
 0x53c   : > { %646 = vrot.lane.b32.xlu0 %v644_v23, %s909_s7 }
 0x5ae   : > { %v647_v27 = vpop.permute.xlu0 %646 }
 0x5af   : > { %v649_v28 = vsel %vm328_vm0, %v634_v26, %v647_v27 }
 0x5b0   : > { %v650_v29 = vpack.c.bf16 %v649_v28, %v649_v28 }
 0x5b2   : > { %652 = vst.msk [vmem:[%s317_s10] sm:$0xf] %vm651_vm5, %v650_v29 }
 0x5b3 PF: > { %s14_s17 = sadd.s32 1, %s902_s17   ;;  %s1033_s15 = smov %s898_s16 }
 0x5b4   : > { %p11_p5 = scmp.ge.s32.totalorder %s14_s17, 4   ;;  %s1034_s16 = smov %s1036_s18 }
 0x5b6   :  { %13 = sbr.rel (!%p11_p5) target bundleno = 2 (0x2), region = 86 }

// kernel: bert_classifier_forward.16
= control target key start
LH: loop header
LB: loop body
LE: loop exit
PB: predicated region body
PF: predicated region fallthrough
CT: control target
= control target key end

     0   :  { %v152_v0 = vmov 0.0   ;;  %vm153_vm0 = vmmov 0   ;;  %vm45_vm1 = vcmask 261120   ;;  %vm116_vm2 = vcmask 519168   ;;  %s192_s1 = inlined_call_operand.vmem [shape: bf16[32,64], index: 1, kind: input, shape index: {}]   ;;  %s193_s0 = inlined_call_operand.vmem [shape: bf16[16,32], index: 0, kind: input, shape index: {}]   ;;  %s194_s2 = inlined_call_operand.vmem [shape: f32[1,64], index: 2, kind: input, shape index: {}]   ;;  %s195_s3 = inlined_call_operand.vmem [shape: bf16[16,64], index: 3, kind: output, shape index: {}]  }
   0x1   :  { %135 = vmatprep.subr.bf16.mxu0 %v152_v0  ;;  %v145_v1 = vld [vmem:[%s192_s1] sm:$0xff]   ;;  %139 = vmatprep.mubr.msk.bf16.mxu0 %vm153_vm0, %v152_v0  ;;  %v146_v2 = vld [vmem:[%s192_s1 + $0x8] sm:$0xff]  }
   0x2   :  { %136 = vmatpush3.bf16.msra.mxu0 %v145_v1  ;;  %v147_v3 = vld [vmem:[%s193_s0] sm:$0xff]  }
   0x3   :  { %137 = vmatprep.subr.bf16.mxu0 %v152_v0  ;;  %v123_v4 = vld [vmem:[%s194_s2] ss:$0 sm:$0xff] }
   0x6   :  { %138 = vmatpush3.bf16.msra.mxu0 %v146_v2 }
   0x9   :  { %140 = vmatmul.mubr.msk.bf16.vlgmr.msra.gmra.mrb[0].mxu0 %vm45_vm1, %v147_v3 }
  0xdc   :  { %v83_v5 = vpop.f32.mrb[0].mxu0 }
  0xdd   :  { %v84_v6 = vadd.f32 %v123_v4, %v83_v5  ;;  %v141_v7 = vpop.f32.mrb[1].mxu0 }
  0xde   :  { %v86_v8 = vpop.f32.mrb[2].mxu0 }
  0xdf   :  { %v92_v9 = vmul.f32 0.044715, %v84_v6  ;;  %v87_v10 = vadd.f32 %v123_v4, %v86_v8  ;;  %v142_v11 = vpop.f32.mrb[3].mxu0  ;;  %v90_v22 = vmul.f32 0.5, %v84_v6 }
  0xe1   :  { %v94_v12 = vmul.f32 %v92_v9, %v84_v6  ;;  %v93_v13 = vmul.f32 0.044715, %v87_v10  ;;  %v91_v26 = vmul.f32 0.5, %v87_v10 }
  0xe3   :  { %v96_v14 = vmul.f32 %v94_v12, %v84_v6  ;;  %v95_v15 = vmul.f32 %v93_v13, %v87_v10 }
  0xe5   :  { %v98_v16 = vadd.f32 %v96_v14, %v84_v6  ;;  %v97_v17 = vmul.f32 %v95_v15, %v87_v10 }
  0xe7   :  { %v100_v18 = vmul.f32 0.7978846, %v98_v16  ;;  %v99_v19 = vadd.f32 %v97_v17, %v87_v10 }
  0xe9   :  { %148 = vtanh.f32 %v100_v18  ;;  %v101_v20 = vmul.f32 0.7978846, %v99_v19 }
  0xeb   :  { %150 = vtanh.f32 %v101_v20 }
  0xf3   :  { %v149_v21 = vpop.eup %148 }
  0xf4   :  { %v104_v23 = vadd.f32 1.0, %v149_v21 }
  0xf5   :  { %v151_v24 = vpop.eup %150 }
  0xf6   :  { %v106_v25 = vmul.f32 %v104_v23, %v90_v22  ;;  %v105_v27 = vadd.f32 1.0, %v151_v24 }
  0xf8   :  { %v130_v28 = vpack.c.bf16 %v106_v25, %v106_v25  ;;  %v107_v29 = vmul.f32 %v105_v27, %v91_v26 }
  0xfa   :  { %117 = vst.msk [vmem:[%s195_s3] sm:$0xf] %vm116_vm2, %v130_v28  ;;  %v131_v30 = vpack.c.bf16 %v107_v29, %v107_v29 }
  0xfc   :  { %118 = vst.msk [vmem:[%s195_s3 + $0x4] sm:$0xf] %vm116_vm2, %v131_v30 }

// kernel: bert_classifier_forward.17
= control target key start
LH: loop header
LB: loop body
LE: loop exit
PB: predicated region body
PF: predicated region fallthrough
CT: control target
= control target key end

     0   :  { %v227_v0 = vmov 0.0   ;;  %vm228_vm0 = vmmov 0   ;;  %vm70_vm1 = vcmask 523264   ;;  %vm121_vm2 = vcmask 261120   ;;  %s301_s1 = inlined_call_operand.vmem [shape: bf16[64,32], index: 1, kind: input, shape index: {}]   ;;  %s302_s0 = inlined_call_operand.vmem [shape: bf16[16,64], index: 0, kind: input, shape index: {}]   ;;  %s303_s3 = inlined_call_operand.vmem [shape: bf16[16,32], index: 3, kind: input, shape index: {}]   ;;  %s304_s2 = inlined_call_operand.vmem [shape: f32[1,32], index: 2, kind: input, shape index: {}]   ;;  %s305_s4 = inlined_call_operand.vmem [shape: f32[1,32], index: 4, kind: input, shape index: {}]   ;;  %s306_s5 = inlined_call_operand.vmem [shape: f32[1,32], index: 5, kind: input, shape index: {}]   ;;  %s307_s6 = inlined_call_operand.vmem [shape: bf16[16,32], index: 6, kind: output, shape index: {}]  }
   0x1   :  { %204 = vmatprep.subr.bf16.mxu0 %v227_v0  ;;  %v218_v1 = vld [vmem:[%s301_s1] sm:$0xff]   ;;  %212 = vmatprep.mubr.msk.bf16.mxu0 %vm228_vm0, %v227_v0  ;;  %v219_v2 = vld [vmem:[%s301_s1 + $0x8] sm:$0xff]   ;;  %v220_v3 = vld [vmem:[%s301_s1 + $0x10] sm:$0xff]   ;;  %vm175_vm3 = vcmask 257024  }
   0x2   :  { %205 = vmatpush3.bf16.msra.mxu0 %v218_v1  ;;  %v221_v4 = vld [vmem:[%s301_s1 + $0x18] sm:$0xff]   ;;  %v222_v5 = vld [vmem:[%s302_s0] sm:$0xff]  }
   0x3   :  { %206 = vmatprep.subr.bf16.mxu0 %v227_v0  ;;  %v196_v6 = vld [vmem:[%s303_s3] sm:$0xff]  }
   0x4   :  { %v182_v7 = vld [vmem:[%s304_s2] ss:$0 sm:$0xff]  ;;  %v197_v8 = vunpack.c.l.bf16 %v196_v6  ;;  %v198_v12 = vunpack.c.h.bf16 %v196_v6 }
   0x5   :  { %v189_v37 = vld [vmem:[%s305_s4] ss:$0 sm:$0xff] }
   0x6   :  { %207 = vmatpush3.bf16.msra.mxu0 %v219_v2  ;;  %v190_v39 = vld [vmem:[%s306_s5] ss:$0 sm:$0xff] }
   0x7   :  { %208 = vmatprep.subr.bf16.mxu0 %v227_v0 }
   0xa   :  { %209 = vmatpush3.bf16.msra.mxu0 %v220_v3 }
   0xb   :  { %210 = vmatprep.subr.bf16.mxu0 %v227_v0 }
   0xe   :  { %211 = vmatpush3.bf16.msra.mxu0 %v221_v4 }
  0x11   :  { %213 = vmatmul.mubr.msk.bf16.vlgmr.msra.gmra.mrb[0].mxu0 %vm70_vm1, %v222_v5 }
  0xe4   :  { %v108_v9 = vpop.f32.mrb[0].mxu0 }
  0xe5   :  { %v109_v10 = vadd.f32 %v182_v7, %v108_v9  ;;  %v214_v11 = vpop.f32.mrb[1].mxu0 }
  0xe6   :  { %v111_v13 = vpop.f32.mrb[2].mxu0 }
  0xe7   :  { %v112_v14 = vadd.f32 %v182_v7, %v111_v13  ;;  %v215_v15 = vpop.f32.mrb[3].mxu0  ;;  %v119_v16 = vadd.f32 %v197_v8, %v109_v10 }
  0xe9   :  { %v122_v17 = vsel %vm121_vm2, %v119_v16, 0.0  ;;  %v120_v18 = vadd.f32 %v198_v12, %v112_v14 }
  0xea   :  { %123 = vadd.xlane.f32.xlu0 %v122_v17 }
  0xeb   :  { %v125_v19 = vsel %vm121_vm2, %v120_v18, 0.0 }
  0xee   :  { %126 = vadd.xlane.f32.xlu0 %v125_v19 }
 0x177   :  { %v124_v20 = vpop.xlane.xlu0 %123 }
 0x178   :  { %v129_v21 = vmul.f32 0.03125, %v124_v20 }
 0x17a   :  { %v131_v22 = vsub.f32 %v119_v16, %v129_v21 }
 0x17b   :  { %v127_v23 = vpop.xlane.xlu0 %126 }
 0x17c   :  { %v130_v24 = vmul.f32 0.03125, %v127_v23  ;;  %v133_v25 = vmul.f32 %v131_v22, %v131_v22 }
 0x17e   :  { %v132_v26 = vsub.f32 %v120_v18, %v130_v24  ;;  %v135_v27 = vsel %vm121_vm2, %v133_v25, 0.0 }
 0x17f   :  { %136 = vadd.xlane.f32.xlu1 %v135_v27 }
 0x180   :  { %v134_v28 = vmul.f32 %v132_v26, %v132_v26 }
 0x182   :  { %v138_v29 = vsel %vm121_vm2, %v134_v28, 0.0 }
 0x183   :  { %139 = vadd.xlane.f32.xlu1 %v138_v29 }
 0x20c   :  { %v137_v30 = vpop.xlane.xlu1 %136 }
 0x20d   :  { %v141_v31 = vmul.f32 0.03125, %v137_v30 }
 0x20f   :  { %v143_v32 = vadd.f32 1e-12, %v141_v31 }
 0x210   :  { %v140_v33 = vpop.xlane.xlu1 %139 }
 0x211   :  { %223 = vrsqrt.f32 %v143_v32  ;;  %v142_v34 = vmul.f32 0.03125, %v140_v33 }
 0x213   :  { %v144_v35 = vadd.f32 1e-12, %v142_v34 }
 0x215   :  { %225 = vrsqrt.f32 %v144_v35 }
 0x21b   :  { %v224_v36 = vpop.eup %223 }
 0x21c   :  { %v147_v38 = vmul.f32 %v224_v36, %v131_v22 }
 0x21e   :  { %v156_v40 = vmul.f32 %v189_v37, %v147_v38 }
 0x21f   :  { %v226_v41 = vpop.eup %225 }
 0x220   :  { %v165_v42 = vadd.f32 %v190_v39, %v156_v40  ;;  %v148_v43 = vmul.f32 %v226_v41, %v132_v26 }
 0x222   :  { %v193_v44 = vpack.c.bf16 %v165_v42, %v165_v42  ;;  %v157_v45 = vmul.f32 %v189_v37, %v148_v43 }
 0x224   :  { %176 = vst.msk [vmem:[%s307_s6] sm:$0xf] %vm175_vm3, %v193_v44  ;;  %v166_v46 = vadd.f32 %v190_v39, %v157_v45 }
 0x226   :  { %v194_v47 = vpack.c.bf16 %v166_v46, %v166_v46 }
 0x228   :  { %177 = vst.msk [vmem:[%s307_s6 + $0x4] sm:$0xf] %vm175_vm3, %v194_v47 }

// kernel: bert_classifier_forward.23
= control target key start
LH: loop header
LB: loop body
LE: loop exit
PB: predicated region body
PF: predicated region fallthrough
CT: control target
= control target key end

     0   :  { %v144_v1 = vmov 0.0   ;;  %vm145_vm0 = vmmov 0   ;;  %s191_s0 = inlined_call_operand.vmem [shape: bf16[2,32], index: 0, kind: input, shape index: {}]   ;;  %s192_s1 = inlined_call_operand.vmem [shape: bf16[32,2], index: 1, kind: input, shape index: {}]   ;;  %s193_s2 = inlined_call_operand.vmem [shape: f32[1,2], index: 2, kind: input, shape index: {}]   ;;  %s194_s3 = inlined_call_operand.hbm [shape: f32[2,2], index: 3, kind: output, shape index: {}]  }
   0x1   :  { %v118_v0 = vld [vmem:[%s192_s1] sm:$0xff]   ;;  %107 = vmatprep.subr.bf16.mxu0 %v144_v1  ;;  %v119_v2 = vld [vmem:[%s192_s1 + $0x8] sm:$0xff]   ;;  %111 = vmatprep.mubr.msk.bf16.mxu0 %vm145_vm0, %v144_v1 }
   0x2   :  { %108 = vmatpush3.bf16.msra.mxu0 %v118_v0 }
   0x3   :  { %109 = vmatprep.subr.bf16.mxu0 %v144_v1 }
   0x4   :  { %8 = vsyncpa [#allocation3], 0  ;;  %v16_v3 = vld [vmem:[%s191_s0] sm:$0x1]  ;;  %vm40_vm1 = vcmask 261120   ;;  %s146_s20 = smov [#allocation2]  }
   0x5   :  { %v100_v4 = vld [vmem:[%s193_s2] ss:$0 sm:$0xff]  ;;  %s92_s21 = sshll.u32 %s146_s20, 4  ;;  %vm84_vm2 = vcmask 9216   ;;  %s93_s21 = int_to_ptr.vmem [resolvable:$true] %s92_s21 }
   0x6   :  { %110 = vmatpush3.bf16.msra.mxu0 %v119_v2  ;;  %s120_s1 = scalar_lea.vmem %s93_s21, 32  ;;  %p125_p1 = scmp.lt.s32.totalorder %s93_s21, %s93_s21 }
   0x7   :  { %p121_p0 = scmp.ne.s32.totalorder %s93_s21, %s120_s1  ;;  %p126_p2 = scmp.lt.s32.totalorder %s120_s1, %s120_s1 }
   0x9   :  { %112 = vmatmul.mubr.msk.bf16.vlgmr.msra.gmra.mrb[0].mxu0 %vm40_vm1, %v16_v3  ;;  %p127_p3 = por %p126_p2, %p125_p1 }
   0xb   :  { %p128_p4 = pnand %p127_p3, %p121_p0 }
  0xdc   :  { %v78_v5 = vpop.f32.mrb[0].mxu0 }
  0xdd   :  { %v79_v6 = vadd.f32 %v100_v4, %v78_v5  ;;  %v113_v7 = vpop.f32.mrb[1].mxu0 }
  0xde   :  { %v81_v8 = vpop.f32.mrb[2].mxu0 }
  0xdf   :  { %v114_v9 = vpop.f32.mrb[3].mxu0  ;;  %85 = vst.msk [vmem:[#allocation2] sm:$0x3] %vm84_vm2, %v79_v6 }
  0xe0   :  { %131 = shalt.err (!%p128_p4)
}
  0xe1   :  { %s132_s2 = scalar_lea.hbm %s194_s3, 32 }
  0xe2   :  { %p133_p5 = scmp.ne.s32.totalorder %s194_s3, %s132_s2  ;;  %p136_p6 = scmp.lt.u32.totalorder %s132_s2, %s194_s3 }
  0xe4   :  { %p138_p7 = pnand %p136_p6, %p133_p5 }
  0xe6   :  { %141 = shalt.err (!%p138_p7)
}
  0xe7   :  { %95 = dma.vmem_to_hbm [thread:$0]  %s93_s21, 32, %s194_s3, [#allocation3]  }
  0xe8   :  { %142 = dma.done.wait [#allocation3], 32  }
  0xe9   :  { %143 = vsyncadd [#allocation3], 4294967264 }
  0xea   :  { %99 = vsyncpa [#allocation3], 1 }

</bundles_post_ra>
